<compile_context>
chip_gen: v5e
topology: v5e:2x2
jax: 0.10.0
libtpu: 0.0.40
codegen_flags: <defaults>
</compile_context>

<pallas_src>
import jax
import jax.numpy as jnp
import numpy as np
from jax.experimental import pallas as pl
from jax.experimental.pallas import tpu as pltpu


def attn_lstm_decoder_kernel(
    x_idx_ref,    # SMEM (1,) int32 : input token id
    h0_ref,       # (1, H)  f32     : previous hidden state
    c0_ref,       # (1, H)  f32     : previous cell state
    enc_ref,      # (S, H)  f32     : encoder outputs
    encp_ref,     # (S, H)  f32     : enc @ W_encoder  (hoisted, per-sequence)
    wh_ref,       # (H, H)  bf16    : fc_hidden.weight.T
    v_ref,        # (1, H)  f32     : attention vector ("weight" nn.Parameter)
    emb_hbm,      # (O, H)  f32     : embedding table, left in HBM (pl.ANY)
    wf_ref,       # (3H,4H) bf16    : fused [Wc@Wih ; Whh]   (gate order i,f,g,o)
    bf_ref,       # (1, 4H) f32     : folded bias bc@Wih + b_ih + b_hh
    wcls_ref,     # (H, O)  bf16    : fc_classifier.weight.T
    bcls_ref,     # (1, O)  f32     : fc_classifier.bias
    out_ref,      # (1, O)  out     : log_softmax logits
    h1_ref,       # (1, H)  out     : new hidden state
    c1_ref,       # (1, H)  out     : new cell state
    attn_ref,     # (S, 1)  out     : attention weights (reshaped to (1,S) in wrapper)
    emb_buf,      # VMEM (1, H) f32 scratch : gathered embedding row
    emb_sem,      # DMA semaphore
):
    H = h0_ref.shape[1]
    O = emb_hbm.shape[0]

    # ---- start the single-row embedding gather early (overlaps the attention math) ----
    idx = jnp.minimum(jnp.maximum(x_idx_ref[0], 0), O - 1)   # clamp: OOB DMA would fault
    emb_cp = pltpu.make_async_copy(emb_hbm.at[pl.ds(idx, 1), :], emb_buf, emb_sem)
    emb_cp.start()

    h0 = h0_ref[...]
    c0 = c0_ref[...]
    enc = enc_ref[...]

    # ---- additive attention ----------------------------------------------------------
    h_proj = jnp.dot(h0.astype(jnp.bfloat16), wh_ref[...],
                     preferred_element_type=jnp.float32)               # (1, H)
    x = jnp.tanh(h_proj + encp_ref[...])                               # (S, H)

    # alignment scores <x_s, v>: VPU multiply + lane reduce (no transpose, no MXU)
    scores = jnp.sum(x * v_ref[...], axis=-1, keepdims=True)           # (S, 1)

    m = jnp.max(scores, axis=0, keepdims=True)                         # (1, 1)
    e = jnp.exp(scores - m)                                            # (S, 1)
    denom = jnp.sum(e, axis=0, keepdims=True)                          # (1, 1)
    attn = e * pl.reciprocal(denom, approx=True)                       # (S, 1)
    attn_ref[...] = attn

    context = jnp.sum(attn * enc, axis=0, keepdims=True)               # (1, H)

    # ---- embedding lookup (row already in flight) --------------------------------------
    # TODO(synk): nn.Dropout on the embedding is eval-mode identity here (training-mode
    #             random masking would need pltpu.prng_seed + stateful_bernoulli).
    emb_cp.wait()
    embedded = emb_buf[...]                                            # (1, H)

    # ---- fused attn_combine + LSTM gates: one (1,3H)@(3H,4H) MXU pass -------------------
    zrow = jnp.concatenate([embedded, context, h0], axis=1).astype(jnp.bfloat16)  # (1,3H)
    gates = (jnp.dot(zrow, wf_ref[...], preferred_element_type=jnp.float32)
             + bf_ref[...])                                            # (1, 4H)

    i_g = jax.nn.sigmoid(gates[:, 0:H])
    f_g = jax.nn.sigmoid(gates[:, H:2 * H])
    g_g = jnp.tanh(gates[:, 2 * H:3 * H])
    o_g = jax.nn.sigmoid(gates[:, 3 * H:4 * H])

    c1 = f_g * c0 + i_g * g_g
    h1 = o_g * jnp.tanh(c1)
    h1_ref[...] = h1
    c1_ref[...] = c1

    # ---- classifier + log_softmax -------------------------------------------------------
    logits = (jnp.dot(h1.astype(jnp.bfloat16), wcls_ref[...],
                      preferred_element_type=jnp.float32) + bcls_ref[...])  # (1, O)
    lm = jnp.max(logits, axis=-1, keepdims=True)
    lse = jnp.log(jnp.sum(jnp.exp(logits - lm), axis=-1, keepdims=True)) + lm
    out_ref[...] = logits - lse


def _vmem_bytes_estimate(H, S, O):
    """Rough VMEM footprint of the kernel's resident operands (bytes)."""
    f32, bf16 = 4, 2
    inputs = (2 * H * f32                 # h0, c0
              + 2 * S * H * f32           # enc, enc_proj
              + H * H * bf16              # w_hidden
              + H * f32                   # attn_v
              + 3 * H * 4 * H * bf16      # w_fused
              + 4 * H * f32               # b_fused
              + H * O * bf16 + O * f32)   # w_cls, b_cls
    outputs = O * f32 + 2 * H * f32 + S * f32
    scratch = H * f32
    return inputs + outputs + scratch


def attn_lstm_decoder(kparams, x_idx, hidden, encoder_outputs):
    """Single decode step.

    Returns (log_probs (1,O), (h1 (1,1,H), c1 (1,1,H)), attn_weights (1,S)).
    Multi-step decode (grid over T with weights resident) and batching B>1 are natural
    extensions, but the PyTorch module is a single-step, batch-1 forward.
    """
    h0, c0 = hidden
    H = h0.shape[-1]
    S = encoder_outputs.shape[0]
    O = kparams["w_cls"].shape[1]

    enc = encoder_outputs.astype(jnp.float32)
    # Hoisted, decode-step-invariant encoder projection (compute once per sequence).
    enc_proj = jnp.dot(enc, kparams["w_encoder"],
                       precision=jax.lax.Precision.HIGHEST).astype(jnp.float32)

    out_shapes = (
        jax.ShapeDtypeStruct((1, O), jnp.float32),
        jax.ShapeDtypeStruct((1, H), jnp.float32),
        jax.ShapeDtypeStruct((1, H), jnp.float32),
        jax.ShapeDtypeStruct((S, 1), jnp.float32),
    )
    smem = pl.BlockSpec(memory_space=pltpu.MemorySpace.SMEM)
    vmem = pl.BlockSpec(memory_space=pltpu.MemorySpace.VMEM)
    hbm = pl.BlockSpec(memory_space=pl.ANY)          # embedding table: no auto-DMA

    vmem_budget = int(max(32 * 1024 * 1024, 2 * _vmem_bytes_estimate(H, S, O) + (4 << 20)))

    output, h1, c1, attn_col = pl.pallas_call(
        attn_lstm_decoder_kernel,
        out_shape=out_shapes,
        in_specs=[smem, vmem, vmem, vmem, vmem, vmem, vmem, hbm, vmem, vmem, vmem, vmem],
        out_specs=(vmem, vmem, vmem, vmem),
        scratch_shapes=[
            pltpu.VMEM((1, H), jnp.float32),          # gathered embedding row
            pltpu.SemaphoreType.DMA,                  # its completion semaphore
        ],
        compiler_params=pltpu.CompilerParams(vmem_limit_bytes=vmem_budget),
    )(
        jnp.asarray(x_idx, jnp.int32).reshape(1),
        h0.reshape(1, H).astype(jnp.float32),
        c0.reshape(1, H).astype(jnp.float32),
        enc,
        enc_proj,
        kparams["w_hidden"],
        kparams["attn_v"],
        kparams["embedding"],
        kparams["w_fused"],
        kparams["b_fused"],
        kparams["w_cls"],
        kparams["b_cls"],
    )
    return output, (h1.reshape(1, 1, H), c1.reshape(1, 1, H)), attn_col.reshape(1, S)


def init_params(key, hidden_size, output_size):
    """PyTorch-layout parameters (Linear weights stored transposed: (in, out))."""
    H, O = hidden_size, output_size
    ks = jax.random.split(key, 12)

    def u(k, shape, scale):
        return jax.random.uniform(k, shape, jnp.float32, -scale, scale)

    s = 1.0 / np.sqrt(H)
    s2 = 1.0 / np.sqrt(2 * H)
    return dict(
        w_hidden=u(ks[0], (H, H), s),            # fc_hidden.weight.T
        w_encoder=u(ks[1], (H, H), s),           # fc_encoder.weight.T
        attn_v=u(ks[2], (1, H), 1.0),            # self.weight
        embedding=jax.random.normal(ks[3], (O, H), jnp.float32),
        w_combine=u(ks[4], (2 * H, H), s2),      # attn_combine.weight.T
        b_combine=u(ks[5], (1, H), s2),
        w_ih=u(ks[6], (4, H, H), s),             # LSTM weights, per-gate (i,f,g,o), transposed
        b_ih=u(ks[7], (4, 1, H), s),
        w_hh=u(ks[8], (4, H, H), s),
        b_hh=u(ks[9], (4, 1, H), s),
        w_cls=u(ks[10], (H, O), s),              # fc_classifier.weight.T
        b_cls=u(ks[11], (1, O), s),
    )


def prepare_kernel_params(params, mxu_dtype=jnp.bfloat16):
    """Offline fold + cast of the PyTorch-layout params into the kernel layout.

    Folds attn_combine into the LSTM input weights:
        gates = dec_in @ W_ih + h0 @ W_hh + b_ih + b_hh
              = [emb, ctx, h0] @ [[Wc @ W_ih]; [W_hh]] + (bc @ W_ih + b_ih + b_hh)
    MXU operand weights are cast to bf16; biases / elementwise operands stay f32.
    """
    hi = jax.lax.Precision.HIGHEST
    w_ih_full = jnp.concatenate([params["w_ih"][k] for k in range(4)], axis=1)  # (H, 4H)
    w_hh_full = jnp.concatenate([params["w_hh"][k] for k in range(4)], axis=1)  # (H, 4H)
    b_ih_full = jnp.concatenate([params["b_ih"][k] for k in range(4)], axis=1)  # (1, 4H)
    b_hh_full = jnp.concatenate([params["b_hh"][k] for k in range(4)], axis=1)  # (1, 4H)

    w_top = jnp.dot(params["w_combine"], w_ih_full, precision=hi)               # (2H, 4H)
    w_fused = jnp.concatenate([w_top, w_hh_full], axis=0).astype(mxu_dtype)     # (3H, 4H)
    b_fused = (jnp.dot(params["b_combine"], w_ih_full, precision=hi)
               + b_ih_full + b_hh_full).astype(jnp.float32)                     # (1, 4H)

    return dict(
        w_hidden=params["w_hidden"].astype(mxu_dtype),
        w_encoder=params["w_encoder"],          # used only in the hoisted per-sequence projection
        attn_v=params["attn_v"],
        embedding=params["embedding"],          # stays in HBM; one row gathered per step
        w_fused=w_fused,
        b_fused=b_fused,
        w_cls=params["w_cls"].astype(mxu_dtype),
        b_cls=params["b_cls"],
    )


def reference(params, x_idx, hidden, enc):
    """Pure-JAX f32 reference reproducing the PyTorch forward (eval-mode dropout)."""
    hi = jax.lax.Precision.HIGHEST
    mm = lambda a, b: jnp.dot(a, b, precision=hi)
    h0 = hidden[0].reshape(1, -1)
    c0 = hidden[1].reshape(1, -1)
    H = h0.shape[1]

    emb = params["embedding"][jnp.asarray(x_idx).reshape(())].reshape(1, -1)
    x = jnp.tanh(mm(h0, params["w_hidden"]) + mm(enc, params["w_encoder"]))   # (S,H)
    scores = jnp.sum(x * params["attn_v"], axis=-1)[None, :]                  # (1,S)
    attn = jax.nn.softmax(scores, axis=1)
    ctx = mm(attn, enc)                                                       # (1,H)
    dec_in = mm(jnp.concatenate([emb, ctx], axis=1), params["w_combine"]) + params["b_combine"]
    gates = [mm(dec_in, params["w_ih"][k]) + params["b_ih"][k]
             + mm(h0, params["w_hh"][k]) + params["b_hh"][k] for k in range(4)]
    i = jax.nn.sigmoid(gates[0]); f = jax.nn.sigmoid(gates[1])
    g = jnp.tanh(gates[2]); o = jax.nn.sigmoid(gates[3])
    c1 = f * c0 + i * g
    h1 = o * jnp.tanh(c1)
    logits = mm(h1, params["w_cls"]) + params["b_cls"]
    out = jax.nn.log_softmax(logits, axis=1)
    return out, (h1.reshape(1, 1, H), c1.reshape(1, 1, H)), attn


if __name__ == "__main__":
    # 128-lane-aligned small shapes (hidden, vocab, encoder seq len)
    H, O, S = 128, 256, 16
    key = jax.random.PRNGKey(0)
    kp, kh, kc, ke = jax.random.split(key, 4)

    params = init_params(kp, H, O)                       # PyTorch-equivalent f32 params
    kparams = prepare_kernel_params(params)              # fused / bf16 kernel params

    x_idx = jnp.array([3], dtype=jnp.int32)              # single token id
    h0 = jax.random.normal(kh, (1, 1, H), jnp.float32)   # hidden[0]
    c0 = jax.random.normal(kc, (1, 1, H), jnp.float32)   # hidden[1]
    enc = jax.random.normal(ke, (S, H), jnp.float32)     # encoder_outputs

    out, (h1, c1), attn = attn_lstm_decoder(kparams, x_idx, (h0, c0), enc)
    jax.block_until_ready((out, h1, c1, attn))

    r_out, (r_h1, r_c1), r_attn = reference(params, x_idx, (h0, c0), enc)
    # Tolerances loosened vs. the f32 version: MXU operands are bf16 (per perf review),
    # while the reference runs f32 at HIGHEST precision.
    np.testing.assert_allclose(np.asarray(out), np.asarray(r_out), rtol=5e-2, atol=5e-2)
    np.testing.assert_allclose(np.asarray(attn), np.asarray(r_attn), rtol=5e-2, atol=5e-2)
    np.testing.assert_allclose(np.asarray(h1), np.asarray(r_h1), rtol=5e-2, atol=5e-2)
    np.testing.assert_allclose(np.asarray(c1), np.asarray(r_c1), rtol=5e-2, atol=5e-2)

    print("KERNEL_OK")
</pallas_src>

<mosaic_0001>
module attributes {stable_mosaic.version = 11 : i64} {
  func.func @attn_lstm_decoder_kernel(%arg0: memref<1xi32, #tpu.memory_space<smem>>, %arg1: memref<1x128xf32, #tpu.memory_space<vmem>>, %arg2: memref<1x128xf32, #tpu.memory_space<vmem>>, %arg3: memref<16x128xf32, #tpu.memory_space<vmem>>, %arg4: memref<16x128xf32, #tpu.memory_space<vmem>>, %arg5: memref<128x128xbf16, #tpu.memory_space<vmem>>, %arg6: memref<1x128xf32, #tpu.memory_space<vmem>>, %arg7: memref<256x128xf32, #tpu.memory_space<any>>, %arg8: memref<384x512xbf16, #tpu.memory_space<vmem>>, %arg9: memref<1x512xf32, #tpu.memory_space<vmem>>, %arg10: memref<128x256xbf16, #tpu.memory_space<vmem>>, %arg11: memref<1x256xf32, #tpu.memory_space<vmem>>, %arg12: memref<1x256xf32, #tpu.memory_space<vmem>>, %arg13: memref<1x128xf32, #tpu.memory_space<vmem>>, %arg14: memref<1x128xf32, #tpu.memory_space<vmem>>, %arg15: memref<16x1xf32, #tpu.memory_space<vmem>>, %arg16: memref<1x128xf32, #tpu.memory_space<vmem>>, %arg17: memref<!tpu.dma_semaphore, #tpu.memory_space<semaphore_mem>>) attributes {dimension_semantics = [], scalar_prefetch = 0 : i64, scratch_operands = 2 : i64, tpu.core_type = #tpu.core_type<tc>} {
    %c0 = arith.constant 0 : index
    %0 = memref.load %arg0[%c0] : memref<1xi32, #tpu.memory_space<smem>>
    %c0_i32 = arith.constant 0 : i32
    %1 = arith.maxsi %0, %c0_i32 : i32
    %c255_i32 = arith.constant 255 : i32
    %2 = arith.minsi %1, %c255_i32 : i32
    %c0_i32_0 = arith.constant 0 : i32
    %3 = tpu.memref_slice %arg7[%2, %c0_i32_0] : memref<256x128xf32, #tpu.memory_space<any>> -> memref<1x128xf32, #tpu.memory_space<any>>
    tpu.enqueue_dma source(%3 : memref<1x128xf32, #tpu.memory_space<any>>) target(%arg16 : memref<1x128xf32, #tpu.memory_space<vmem>>) target_semaphore(%arg17 : memref<!tpu.dma_semaphore, #tpu.memory_space<semaphore_mem>>)
    %c0_1 = arith.constant 0 : index
    %c0_2 = arith.constant 0 : index
    %4 = vector.load %arg1[%c0_1, %c0_2] : memref<1x128xf32, #tpu.memory_space<vmem>>, vector<1x128xf32>
    %c0_3 = arith.constant 0 : index
    %c0_4 = arith.constant 0 : index
    %5 = vector.load %arg2[%c0_3, %c0_4] : memref<1x128xf32, #tpu.memory_space<vmem>>, vector<1x128xf32>
    %c0_5 = arith.constant 0 : index
    %c0_6 = arith.constant 0 : index
    %6 = vector.load %arg3[%c0_5, %c0_6] : memref<16x128xf32, #tpu.memory_space<vmem>>, vector<16x128xf32>
    %7 = arith.truncf %4 : vector<1x128xf32> to vector<1x128xbf16>
    %c0_7 = arith.constant 0 : index
    %c0_8 = arith.constant 0 : index
    %8 = vector.load %arg5[%c0_7, %c0_8] : memref<128x128xbf16, #tpu.memory_space<vmem>>, vector<128x128xbf16>
    %cst = arith.constant dense<0.000000e+00> : vector<1x128xf32>
    %9 = tpu.matmul %7, %8, %cst {dimension_numbers = #tpu.dot_dimension_numbers<[1], [0], [0], [1], [0, 0, 1, 1], [], []>} : vector<1x128xbf16>, vector<128x128xbf16>, vector<1x128xf32> -> vector<1x128xf32>
    %c0_9 = arith.constant 0 : index
    %c0_10 = arith.constant 0 : index
    %10 = vector.load %arg4[%c0_9, %c0_10] : memref<16x128xf32, #tpu.memory_space<vmem>>, vector<16x128xf32>
    %11 = vector.broadcast %9 : vector<1x128xf32> to vector<16x128xf32>
    %12 = arith.addf %11, %10 : vector<16x128xf32>
    %13 = math.tanh %12 : vector<16x128xf32>
    %c0_11 = arith.constant 0 : index
    %c0_12 = arith.constant 0 : index
    %14 = vector.load %arg6[%c0_11, %c0_12] : memref<1x128xf32, #tpu.memory_space<vmem>>, vector<1x128xf32>
    %15 = vector.broadcast %14 : vector<1x128xf32> to vector<16x128xf32>
    %16 = arith.mulf %13, %15 : vector<16x128xf32>
    %cst_13 = arith.constant dense<0.000000e+00> : vector<16xf32>
    %17 = vector.multi_reduction <add>, %16, %cst_13 [1] : vector<16x128xf32> to vector<16xf32>
    %18 = vector.shape_cast %17 : vector<16xf32> to vector<16x1xf32>
    %cst_14 = arith.constant dense<0xFF800000> : vector<1xf32>
    %19 = vector.multi_reduction <maximumf>, %18, %cst_14 [0] : vector<16x1xf32> to vector<1xf32>
    %20 = vector.shape_cast %19 : vector<1xf32> to vector<1x1xf32>
    %21 = vector.broadcast %20 : vector<1x1xf32> to vector<16x1xf32>
    %22 = arith.subf %18, %21 : vector<16x1xf32>
    %23 = math.exp %22 : vector<16x1xf32>
    %cst_15 = arith.constant dense<0.000000e+00> : vector<1xf32>
    %24 = vector.multi_reduction <add>, %23, %cst_15 [0] : vector<16x1xf32> to vector<1xf32>
    %25 = vector.shape_cast %24 : vector<1xf32> to vector<1x1xf32>
    %26 = tpu.reciprocal %25 {approx = true} : vector<1x1xf32> -> vector<1x1xf32>
    %27 = vector.broadcast %26 : vector<1x1xf32> to vector<16x1xf32>
    %28 = arith.mulf %23, %27 : vector<16x1xf32>
    %c0_16 = arith.constant 0 : index
    %c0_17 = arith.constant 0 : index
    %29 = vector.load %arg15[%c0_16, %c0_17] : memref<16x1xf32, #tpu.memory_space<vmem>>, vector<16x1xf32>
    tpu.vector_store %arg15[%c0_16, %c0_17], %28 {strides = array<i32>} : memref<16x1xf32, #tpu.memory_space<vmem>>, vector<16x1xf32>,
    %30 = vector.broadcast %28 : vector<16x1xf32> to vector<16x128xf32>
    %31 = arith.mulf %30, %6 : vector<16x128xf32>
    %cst_18 = arith.constant dense<0.000000e+00> : vector<128xf32>
    %32 = vector.multi_reduction <add>, %31, %cst_18 [0] : vector<16x128xf32> to vector<128xf32>
    %33 = vector.shape_cast %32 : vector<128xf32> to vector<1x128xf32>
    %c0_i32_19 = arith.constant 0 : i32
    %34 = tpu.memref_slice %arg7[%2, %c0_i32_19] : memref<256x128xf32, #tpu.memory_space<any>> -> memref<1x128xf32, #tpu.memory_space<any>>
    tpu.wait_dma2 semaphore(%arg17 : memref<!tpu.dma_semaphore, #tpu.memory_space<semaphore_mem>>) src(%34 : memref<1x128xf32, #tpu.memory_space<any>>) dst(%arg16 : memref<1x128xf32, #tpu.memory_space<vmem>>)
    %c0_20 = arith.constant 0 : index
    %c0_21 = arith.constant 0 : index
    %35 = vector.load %arg16[%c0_20, %c0_21] : memref<1x128xf32, #tpu.memory_space<vmem>>, vector<1x128xf32>
    %36 = tpu.concatenate %35, %33, %4 in 1 : vector<1x128xf32>, vector<1x128xf32>, vector<1x128xf32> -> vector<1x384xf32>
    %37 = arith.truncf %36 : vector<1x384xf32> to vector<1x384xbf16>
    %c0_22 = arith.constant 0 : index
    %c0_23 = arith.constant 0 : index
    %38 = vector.load %arg8[%c0_22, %c0_23] : memref<384x512xbf16, #tpu.memory_space<vmem>>, vector<384x512xbf16>
    %cst_24 = arith.constant dense<0.000000e+00> : vector<1x512xf32>
    %39 = tpu.matmul %37, %38, %cst_24 {dimension_numbers = #tpu.dot_dimension_numbers<[1], [0], [0], [1], [0, 0, 1, 1], [], []>} : vector<1x384xbf16>, vector<384x512xbf16>, vector<1x512xf32> -> vector<1x512xf32>
    %c0_25 = arith.constant 0 : index
    %c0_26 = arith.constant 0 : index
    %40 = vector.load %arg9[%c0_25, %c0_26] : memref<1x512xf32, #tpu.memory_space<vmem>>, vector<1x512xf32>
    %41 = arith.addf %39, %40 : vector<1x512xf32>
    %42 = vector.extract_strided_slice %41 {offsets = [0, 0], sizes = [1, 128], strides = [1, 1]} : vector<1x512xf32> to vector<1x128xf32>
    %43 = arith.negf %42 : vector<1x128xf32>
    %44 = math.exp %43 : vector<1x128xf32>
    %cst_27 = arith.constant 1.000000e+00 : f32
    %45 = vector.broadcast %cst_27 : f32 to vector<1x128xf32>
    %46 = arith.addf %45, %44 : vector<1x128xf32>
    %47 = arith.divf %45, %46 : vector<1x128xf32>
    %48 = vector.extract_strided_slice %41 {offsets = [0, 128], sizes = [1, 128], strides = [1, 1]} : vector<1x512xf32> to vector<1x128xf32>
    %49 = arith.negf %48 : vector<1x128xf32>
    %50 = math.exp %49 : vector<1x128xf32>
    %cst_28 = arith.constant 1.000000e+00 : f32
    %51 = vector.broadcast %cst_28 : f32 to vector<1x128xf32>
    %52 = arith.addf %51, %50 : vector<1x128xf32>
    %53 = arith.divf %51, %52 : vector<1x128xf32>
    %54 = vector.extract_strided_slice %41 {offsets = [0, 256], sizes = [1, 128], strides = [1, 1]} : vector<1x512xf32> to vector<1x128xf32>
    %55 = math.tanh %54 : vector<1x128xf32>
    %56 = vector.extract_strided_slice %41 {offsets = [0, 384], sizes = [1, 128], strides = [1, 1]} : vector<1x512xf32> to vector<1x128xf32>
    %57 = arith.negf %56 : vector<1x128xf32>
    %58 = math.exp %57 : vector<1x128xf32>
    %cst_29 = arith.constant 1.000000e+00 : f32
    %59 = vector.broadcast %cst_29 : f32 to vector<1x128xf32>
    %60 = arith.addf %59, %58 : vector<1x128xf32>
    %61 = arith.divf %59, %60 : vector<1x128xf32>
    %62 = arith.mulf %53, %5 : vector<1x128xf32>
    %63 = arith.mulf %47, %55 : vector<1x128xf32>
    %64 = arith.addf %62, %63 : vector<1x128xf32>
    %65 = math.tanh %64 : vector<1x128xf32>
    %66 = arith.mulf %61, %65 : vector<1x128xf32>
    %c0_30 = arith.constant 0 : index
    %c0_31 = arith.constant 0 : index
    %67 = vector.load %arg13[%c0_30, %c0_31] : memref<1x128xf32, #tpu.memory_space<vmem>>, vector<1x128xf32>
    tpu.vector_store %arg13[%c0_30, %c0_31], %66 {strides = array<i32>} : memref<1x128xf32, #tpu.memory_space<vmem>>, vector<1x128xf32>,
    %c0_32 = arith.constant 0 : index
    %c0_33 = arith.constant 0 : index
    %68 = vector.load %arg14[%c0_32, %c0_33] : memref<1x128xf32, #tpu.memory_space<vmem>>, vector<1x128xf32>
    tpu.vector_store %arg14[%c0_32, %c0_33], %64 {strides = array<i32>} : memref<1x128xf32, #tpu.memory_space<vmem>>, vector<1x128xf32>,
    %69 = arith.truncf %66 : vector<1x128xf32> to vector<1x128xbf16>
    %c0_34 = arith.constant 0 : index
    %c0_35 = arith.constant 0 : index
    %70 = vector.load %arg10[%c0_34, %c0_35] : memref<128x256xbf16, #tpu.memory_space<vmem>>, vector<128x256xbf16>
    %cst_36 = arith.constant dense<0.000000e+00> : vector<1x256xf32>
    %71 = tpu.matmul %69, %70, %cst_36 {dimension_numbers = #tpu.dot_dimension_numbers<[1], [0], [0], [1], [0, 0, 1, 1], [], []>} : vector<1x128xbf16>, vector<128x256xbf16>, vector<1x256xf32> -> vector<1x256xf32>
    %c0_37 = arith.constant 0 : index
    %c0_38 = arith.constant 0 : index
    %72 = vector.load %arg11[%c0_37, %c0_38] : memref<1x256xf32, #tpu.memory_space<vmem>>, vector<1x256xf32>
    %73 = arith.addf %71, %72 : vector<1x256xf32>
    %cst_39 = arith.constant dense<0xFF800000> : vector<1xf32>
    %74 = vector.multi_reduction <maximumf>, %73, %cst_39 [1] : vector<1x256xf32> to vector<1xf32>
    %75 = vector.shape_cast %74 : vector<1xf32> to vector<1x1xf32>
    %76 = vector.broadcast %75 : vector<1x1xf32> to vector<1x256xf32>
    %77 = arith.subf %73, %76 : vector<1x256xf32>
    %78 = math.exp %77 : vector<1x256xf32>
    %cst_40 = arith.constant dense<0.000000e+00> : vector<1xf32>
    %79 = vector.multi_reduction <add>, %78, %cst_40 [1] : vector<1x256xf32> to vector<1xf32>
    %80 = vector.shape_cast %79 : vector<1xf32> to vector<1x1xf32>
    %81 = math.log %80 : vector<1x1xf32>
    %82 = arith.addf %81, %75 : vector<1x1xf32>
    %83 = vector.broadcast %82 : vector<1x1xf32> to vector<1x256xf32>
    %84 = arith.subf %73, %83 : vector<1x256xf32>
    %c0_41 = arith.constant 0 : index
    %c0_42 = arith.constant 0 : index
    %85 = vector.load %arg12[%c0_41, %c0_42] : memref<1x256xf32, #tpu.memory_space<vmem>>, vector<1x256xf32>
    tpu.vector_store %arg12[%c0_41, %c0_42], %84 {strides = array<i32>} : memref<1x256xf32, #tpu.memory_space<vmem>>, vector<1x256xf32>,
    return
  }
}

</mosaic_0001>

<bundles_post_ra>
// kernel: tpu_custom_call.1
= control target key start
LH: loop header
LB: loop body
LE: loop exit
PB: predicated region body
PF: predicated region fallthrough
CT: control target
= control target key end

     0   :  { %22 = vsyncpa [#allocation6], 0  ;;  %s2517_s0 = inlined_call_operand.<no memory space> [shape: s32[1], index: 0, kind: input, shape index: {}]   ;;  %s2518_s1 = inlined_call_operand.vmem [shape: f32[1,128], index: 1, kind: input, shape index: {}]   ;;  %s2519_s2 = inlined_call_operand.hbm [shape: f32[1,128], index: 2, kind: input, shape index: {}]   ;;  %s2520_s3 = inlined_call_operand.hbm [shape: f32[16,128], index: 3, kind: input, shape index: {}]   ;;  %s2521_s4 = inlined_call_operand.hbm [shape: f32[16,128], index: 4, kind: input, shape index: {}]   ;;  %s2522_s5 = inlined_call_operand.hbm [shape: bf16[128,128], index: 5, kind: input, shape index: {}]   ;;  %s2523_s6 = inlined_call_operand.hbm [shape: f32[1,128], index: 6, kind: input, shape index: {}]   ;;  %s2524_s7 = inlined_call_operand.hbm [shape: f32[256,128], index: 7, kind: input, shape index: {}]   ;;  %s2525_s8 = inlined_call_operand.hbm [shape: bf16[384,512], index: 8, kind: input, shape index: {}]   ;;  %s2526_s9 = inlined_call_operand.vmem [shape: f32[1,512], index: 9, kind: input, shape index: {}]   ;;  %s2527_s10 = inlined_call_operand.hbm [shape: bf16[128,256], index: 10, kind: input, shape index: {}]   ;;  %s2528_s11 = inlined_call_operand.vmem [shape: f32[1,256], index: 11, kind: input, shape index: {}]   ;;  %s2529_s12 = inlined_call_operand.hbm [shape: f32[1,256], index: 12, kind: output, shape index: {0}]   ;;  %s2530_s13 = inlined_call_operand.hbm [shape: f32[1,128], index: 13, kind: output, shape index: {1}]   ;;  %s2531_s14 = inlined_call_operand.hbm [shape: f32[1,128], index: 14, kind: output, shape index: {2}]   ;;  %s2532_s15 = inlined_call_operand.vmem [shape: f32[16,1], index: 15, kind: output, shape index: {3}]  }
   0x1   :  { %23 = vsyncpa [#allocation9], 0 }
   0x2   :  { %24 = vsyncpa [#allocation12], 0 }
   0x3   :  { %25 = vsyncpa [#allocation15], 0 }
   0x4   :  { %26 = vsyncpa [#allocation7], 0  ;;  %s47_s20 = sshll.u32 %s2520_s3, 4  ;;  %s48_s20 = int_to_ptr.hbm [resolvable:$true] %s47_s20 }
   0x5   :  { %27 = vsyncpa [#allocation19], 0  ;;  %s2279_s21 = smov [#allocation8]   ;;  %s73_s25 = sshll.u32 %s2522_s5, 4  ;;  %s74_s25 = int_to_ptr.hbm [resolvable:$true] %s73_s25 }
   0x6   :  { %s49_s22 = sshll.u32 %s2279_s21, 4  ;;  %s2533_s26 = smov 128   ;;  %s50_s22 = int_to_ptr.vmem [resolvable:$true] %s49_s22 }
   0x7   :  { %s2535_s27 = smov 8   ;;  %s2282_s28 = smov [#allocation11]  }
   0x8   :  { %55 = dma.hbm_to_vmem [thread:$0]  %s48_s20, 256, %s50_s22, [#allocation9], %s2533_s26, %s2533_s26, %s2535_s27  }
   0x9   :  { %s75_s29 = sshll.u32 %s2282_s28, 4  ;;  %s2283_s3 = smov 64   ;;  %s76_s29 = int_to_ptr.vmem [resolvable:$true] %s75_s29 }
   0xa   :  { %s2284_s30 = smov 4   ;;  %s97_s18 = sshll.u32 %s2525_s8, 4  ;;  %s98_s18 = int_to_ptr.hbm [resolvable:$true] %s97_s18 }
   0xb   :  { %81 = dma.hbm_to_vmem [thread:$0]  %s74_s25, 1024, %s76_s29, [#allocation12], %s2283_s3, %s2283_s3, %s2284_s30  }
   0xc   :  { %s2285_s19 = smov [#allocation14]   ;;  %s37_s24 = sshll.u32 %s2519_s2, 4  ;;  %s38_s24 = int_to_ptr.hbm [resolvable:$true] %s37_s24 }
   0xd   :  { %s99_s5 = sshll.u32 %s2285_s19, 4  ;;  %s2286_s20 = smov 256   ;;  %s100_s5 = int_to_ptr.vmem [resolvable:$true] %s99_s5 }
   0xe   :  { %s2287_s22 = smov 16   ;;  %s2288_s28 = smov [#allocation5]  }
   0xf   :  { %105 = dma.hbm_to_vmem [thread:$0]  %s98_s18, 12288, %s100_s5, [#allocation15], %s2286_s20, %s2286_s20, %s2287_s22  }
  0x10   :  { %s39_s26 = sshll.u32 %s2288_s28, 4  ;;  %s60_s29 = sshll.u32 %s2521_s4, 4  ;;  %s40_s26 = int_to_ptr.vmem [resolvable:$true] %s39_s26  ;;  %s61_s29 = int_to_ptr.hbm [resolvable:$true] %s60_s29 }
  0x11   :  { %42 = dma.hbm_to_vmem [thread:$0]  %s38_s24, 16, %s40_s26, [#allocation6]  }
  0x12   :  { %s87_s30 = sshll.u32 %s2523_s6, 4  ;;  %s2289_s16 = smov [#allocation10]   ;;  %s88_s30 = int_to_ptr.hbm [resolvable:$true] %s87_s30 }
  0x13   :  { %s62_s17 = sshll.u32 %s2289_s16, 4  ;;  %s2537_s2 = smov 8   ;;  %s63_s17 = int_to_ptr.vmem [resolvable:$true] %s62_s17 }
  0x14   :  { %s2538_s18 = smov 128   ;;  %s2290_s19 = smov [#allocation13]  }
  0x15   :  { %68 = dma.hbm_to_vmem [thread:$0]  %s61_s29, 256, %s63_s17, [#allocation9], %s2538_s18, %s2538_s18, %s2537_s2  }
  0x16   :  { %s89_s5 = sshll.u32 %s2290_s19, 4  ;;  %s112_s4 = sshll.u32 %s2527_s10, 4  ;;  %s90_s5 = int_to_ptr.vmem [resolvable:$true] %s89_s5  ;;  %s113_s4 = int_to_ptr.hbm [resolvable:$true] %s112_s4 }
  0x17   :  { %92 = dma.hbm_to_vmem [thread:$0]  %s88_s30, 16, %s90_s5, [#allocation12]  }
  0x18   :  { %s2291_s26 = smov [#allocation16]  }
  0x19   :  { %s114_s23 = sshll.u32 %s2291_s26, 4  ;;  %s115_s23 = int_to_ptr.vmem [resolvable:$true] %s114_s23 }
  0x1a   :  { %120 = dma.hbm_to_vmem [thread:$0]  %s113_s4, 2048, %s115_s23, [#allocation15], %s2538_s18, %s2538_s18, %s2537_s2  }
  0x1b   :  { %2265 = dma.done.wait [#allocation6], 16  }
  0x1c   :  { %2266 = vsyncadd [#allocation6], 4294967280 }
  0x1d   :  { %2267 = dma.done.wait [#allocation9], 512  }
  0x1e   :  { %2268 = vsyncadd [#allocation9], 4294966784 }
  0x1f   :  { %2269 = dma.done.wait [#allocation12], 1040  }
  0x20   :  { %2270 = vsyncadd [#allocation12], 4294966256 }
  0x21   :  { %2271 = dma.done.wait [#allocation15], 14336  }
  0x22   :  { %2272 = vsyncadd [#allocation15], 4294952960  ;;  %v2406_v0 = vld [vmem:[#allocation5] sm:$0x1]  ;;  %v1837_v2 = vld [vmem:[#allocation11 + $0x30] sm:$0xff]  ;;  %p152_p0 = scmp.gt.s32.totalorder %s2517_s0, 0 }
  0x23   :  { %v1838_v1 = vld [vmem:[#allocation11 + $0x38] sm:$0xff]  ;;  %v1836_v3 = vld [vmem:[#allocation11 + $0x28] sm:$0xff]  ;;  %v1835_v4 = vld [vmem:[#allocation11 + $0x20] sm:$0xff]  ;;  %p1340_p1 = scmp.lt.s32.totalorder %s2517_s0, 255  ;;  %s2292_s16 = smov [#allocation2]  }
  0x24   :  { %239 = vmatpush.bf16.msra.mxu0 %v1838_v1  ;;  %v1834_v5 = vld [vmem:[#allocation11 + $0x18] sm:$0xff]  ;;  %v1833_v6 = vld [vmem:[#allocation11 + $0x10] sm:$0xff]  ;;  %v1832_v7 = vld [vmem:[#allocation11 + $0x8] sm:$0xff]  ;;  %s153_s28 = scalar_select %p152_p0, %s2517_s0, 0 }
  0x25   :  { %v1831_v8 = vld [vmem:[#allocation11] sm:$0xff]  ;;  %v170_v9 = vld [vmem:[%s2518_s1] sm:$0x1]  ;;  %v252_v12 = vld [vmem:[#allocation10] sm:$0xff]  ;;  %s166_s17 = sshll.u32 %s2292_s16, 4  ;;  %s2173_s27 = scalar_lea.hbm %s2524_s7, 256  ;;  %s167_s17 = int_to_ptr.vmem [resolvable:$true] %s166_s17 }
  0x26   :  { %v2411_v10 = vpack.c.bf16 %v170_v9, %v170_v9  ;;  %v253_v15 = vld [vmem:[#allocation10 + $0x8] sm:$0xff]  ;;  %v1968_v18 = vld [vmem:[#allocation13] ss:$0 sm:$0xff]  ;;  %s2542_s28 = smov (!%p1340_p1, %s153_s28), 255 }
  0x27   :  { %s156_s30 = scalar_lea.hbm %s2524_s7, %s2542_s28 }
  0x28   :  { %240 = vmatpush.bf16.msra.mxu0 %v1837_v2  ;;  %s164_s2 = sshll.u32 %s156_s30, 4  ;;  %s165_s2 = int_to_ptr.hbm [resolvable:$true] %s164_s2 }
  0x29   :  { %s2169_s18 = sshra.s32 %s165_s2, 4  ;;  %s2170_s18 = int_to_ptr.hbm [resolvable:$true] %s2169_s18 }
  0x2a   :  { %s2171_s19 = scalar_lea.hbm %s2170_s18, 1  ;;  %p2174_p3 = scmp.lt.s32.totalorder %s2170_s18, %s2524_s7 }
  0x2b   :  { %p2172_p2 = scmp.ne.s32.totalorder %s2170_s18, %s2171_s19  ;;  %p2175_p4 = scmp.lt.s32.totalorder %s2173_s27, %s2171_s19 }
  0x2c   :  { %241 = vmatpush.bf16.msra.mxu0 %v1836_v3 }
  0x2d   :  { %p2176_p5 = por %p2175_p4, %p2174_p3 }
  0x2f   :  { %p2177_p6 = pnand %p2176_p5, %p2172_p2 }
  0x30   :  { %242 = vmatpush.bf16.msra.mxu0 %v1835_v4 }
  0x34   :  { %243 = vmatpush.bf16.msra.mxu0 %v1834_v5 }
  0x38   :  { %244 = vmatpush.bf16.msra.mxu0 %v1833_v6 }
  0x3c   :  { %245 = vmatpush.bf16.msra.mxu0 %v1832_v7 }
  0x40   :  { %246 = vmatpush.bf16.msra.mxu0 %v1831_v8 }
  0x43   :  { %247 = vmatmul.bf16.vlgmr.msra.gmra.mxu0 %v2411_v10 }
  0xc0   :  { %v248_v11 = vpop.f32.mrf.mxu0 }
  0xc1   :  { %v254_v13 = vperm.slane %v248_v11, 0 }
  0xc3   :  { %v255_v14 = vadd.f32 %v254_v13, %v252_v12  ;;  %v256_v16 = vadd.f32 %v254_v13, %v253_v15 }
  0xc5   :  { %1969 = vtanh.f32 %v255_v14 }
  0xc6   :  { %1971 = vtanh.f32 %v256_v16 }
  0xc8   :  { %v250_v17 = vpop.f32.mrf.mxu0 }
  0xcb   :  { %v1970_v19 = vpop.eup %1969 }
  0xcc   :  { %v263_v20 = vmul.f32 %v1970_v19, %v1968_v18  ;;  %v1972_v21 = vpop.eup %1971 }
  0xcd   :  { %v264_v22 = vmul.f32 %v1972_v21, %v1968_v18 }
  0xce   :  { %265 = vadd.xlane.f32.xlu0 %v263_v20 }
  0xd6   :  { %267 = vadd.xlane.f32.xlu0 %v264_v22 }
  0xd7   :  { %2180 = shalt.err (!%p2177_p6)  }
  0xd8   :  { %169 = dma.hbm_to_vmem [thread:$0]  %s165_s2, 16, %s167_s17, [#allocation3]  ;;  %v172_v46 = vld [vmem:[#allocation8] sm:$0xff]  ;;  %v173_v47 = vld [vmem:[#allocation8 + $0x8] sm:$0xff]  ;;  %vm292_vm0 = vcmask 7168  }
 0x141   :  { %v266_v23 = vpop.xlane.xlu0 %265 }
 0x149   :  { %v268_v24 = vpop.xlane.xlu0 %267 }
 0x14a   :  { %v269_v25 = vmax.f32 %v266_v23, %v268_v24 }
 0x14c   :  { %v270_v26 = vrot.slane %v269_v25, 4 }
 0x14e   :  { %v271_v27 = vmax.f32 %v269_v25, %v270_v26 }
 0x150   :  { %v272_v28 = vrot.slane %v271_v27, 2 }
 0x152   :  { %v273_v29 = vmax.f32 %v271_v27, %v272_v28 }
 0x154   :  { %v274_v30 = vrot.slane %v273_v29, 1 }
 0x156   :  { %v275_v31 = vmax.f32 %v273_v29, %v274_v30 }
 0x158   :  { %v276_v32 = vsub.f32 %v266_v23, %v275_v31  ;;  %v277_v33 = vsub.f32 %v268_v24, %v275_v31 }
 0x15a   :  { %v278_v34 = vmul.f32 1.442695, %v276_v32  ;;  %v280_v35 = vmul.f32 1.442695, %v277_v33 }
 0x15c   :  { %1973 = vpow2.f32 %v278_v34 }
 0x15d   :  { %1975 = vpow2.f32 %v280_v35 }
 0x162   :  { %v1974_v36 = vpop.eup %1973 }
 0x163   :  { %v1976_v37 = vpop.eup %1975 }
 0x164   :  { %v282_v38 = vadd.f32 %v1976_v37, %v1974_v36 }
 0x166   :  { %v283_v39 = vrot.slane %v282_v38, 4 }
 0x168   :  { %v284_v40 = vadd.f32 %v283_v39, %v282_v38 }
 0x16a   :  { %v285_v41 = vrot.slane %v284_v40, 2 }
 0x16c   :  { %v286_v42 = vadd.f32 %v285_v41, %v284_v40 }
 0x16e   :  { %v287_v43 = vrot.slane %v286_v42, 1 }
 0x170   :  { %v288_v44 = vadd.f32 %v287_v43, %v286_v42 }
 0x172   :  { %1977 = vrcp.f32 %v288_v44 }
 0x178   :  { %v1978_v45 = vpop.eup %1977 }
 0x179   :  { %v290_v48 = vmul.f32 %v1978_v45, %v1974_v36  ;;  %v291_v49 = vmul.f32 %v1978_v45, %v1976_v37 }
 0x17b   :  { %293 = vst.msk [vmem:[%s2532_s15] sm:$0xff] %vm292_vm0, %v290_v48  ;;  %v295_v50 = vmul.f32 %v290_v48, %v172_v46  ;;  %v296_v51 = vmul.f32 %v291_v49, %v173_v47 }
 0x17c   :  { %294 = vst.msk [vmem:[%s2532_s15 + $0x8] sm:$0xff] %vm292_vm0, %v291_v49 }
 0x17d   :  { %v297_v52 = vadd.f32 %v296_v51, %v295_v50 }
 0x17f   :  { %v298_v53 = vrot.slane %v297_v52, 4 }
 0x181   :  { %v299_v54 = vadd.f32 %v298_v53, %v297_v52 }
 0x183   :  { %v300_v55 = vrot.slane %v299_v54, 2 }
 0x185   :  { %v301_v56 = vadd.f32 %v300_v55, %v299_v54 }
 0x187   :  { %v302_v57 = vrot.slane %v301_v56, 1 }
 0x189   :  { %v2438_v58 = vadd.f32 %v302_v57, %v301_v56 }
 0x18a   :  { %2273 = dma.done.wait [#allocation3], 16 }
 0x18b   :  { %2274 = vsyncadd [#allocation3], 4294967280  ;;  %v1491_v59 = vld [vmem:[#allocation14 + $0xe0] sm:$0xf]  ;;  %v1869_v60 = vld [vmem:[#allocation14 + $0xec] sm:$0xf0] }
 0x18c   :  { %v1619_v61 = vld [vmem:[#allocation14 + $0x1e0] sm:$0xf]  ;;  %v1492_v62 = vor.u32 %v1869_v60, %v1491_v59  ;;  %v1901_v63 = vld [vmem:[#allocation14 + $0x1ec] sm:$0xf0]  ;;  %v1867_v5 = vld [vmem:[#allocation14 + $0xe4] sm:$0xf] }
 0x18d   :  { %v1747_v1 = vld [vmem:[#allocation14 + $0x2e0] sm:$0xf]  ;;  %v1933_v2 = vld [vmem:[#allocation14 + $0x2ec] sm:$0xf0]  ;;  %v1620_v3 = vor.u32 %v1901_v63, %v1619_v61  ;;  %v1493_v6 = vld [vmem:[#allocation14 + $0xf0] sm:$0xf0] }
 0x18e   :  { %v1748_v4 = vor.u32 %v1933_v2, %v1747_v1  ;;  %v1475_v7 = vld [vmem:[#allocation14 + $0xc0] sm:$0xf]  ;;  %896 = vmatpush.bf16.msra.mxu1 %v1492_v62  ;;  %v1496_v8 = vor.u32 %v1867_v5, %v1493_v6  ;;  %v1865_v9 = vld [vmem:[#allocation14 + $0xcc] sm:$0xf0]  ;;  %v1863_v17 = vld [vmem:[#allocation14 + $0xc4] sm:$0xf] }
 0x18f   :  { %v1603_v11 = vld [vmem:[#allocation14 + $0x1c0] sm:$0xf]  ;;  %v1897_v12 = vld [vmem:[#allocation14 + $0x1cc] sm:$0xf0]  ;;  %909 = vmatpush.bf16.msra.mxu2 %v1620_v3  ;;  %v1476_v13 = vor.u32 %v1865_v9, %v1475_v7  ;;  %v1477_v19 = vld [vmem:[#allocation14 + $0xd0] sm:$0xf0] }
 0x190   :  { %922 = vmatpush.bf16.msra.mxu3 %v1748_v4  ;;  %v1604_v14 = vor.u32 %v1897_v12, %v1603_v11  ;;  %v1731_v15 = vld [vmem:[#allocation14 + $0x2c0] sm:$0xf]  ;;  %v1929_v16 = vld [vmem:[#allocation14 + $0x2cc] sm:$0xf0]  ;;  %935 = vmatpush.bf16.msrb.mxu0 %v1496_v8  ;;  %v1480_v22 = vor.u32 %v1863_v17, %v1477_v19  ;;  %v1859_v28 = vld [vmem:[#allocation14 + $0xa4] sm:$0xf] }
 0x191   :  { %v1732_v18 = vor.u32 %v1929_v16, %v1731_v15  ;;  %v1459_v20 = vld [vmem:[#allocation14 + $0xa0] sm:$0xf]  ;;  %v1861_v21 = vld [vmem:[#allocation14 + $0xac] sm:$0xf0]  ;;  %v1461_v29 = vld [vmem:[#allocation14 + $0xb0] sm:$0xf0] }
 0x192   :  { %v1587_v23 = vld [vmem:[#allocation14 + $0x1a0] sm:$0xf]  ;;  %v1893_v24 = vld [vmem:[#allocation14 + $0x1ac] sm:$0xf0]  ;;  %897 = vmatpush.bf16.msra.mxu1 %v1476_v13  ;;  %v1460_v26 = vor.u32 %v1861_v21, %v1459_v20  ;;  %v1464_v35 = vor.u32 %v1859_v28, %v1461_v29  ;;  %v1855_v39 = vld [vmem:[#allocation14 + $0x84] sm:$0xf] }
 0x193   :  { %v1715_v25 = vld [vmem:[#allocation14 + $0x2a0] sm:$0xf]  ;;  %v1925_v27 = vld [vmem:[#allocation14 + $0x2ac] sm:$0xf0]  ;;  %910 = vmatpush.bf16.msra.mxu2 %v1604_v14  ;;  %v1588_v30 = vor.u32 %v1893_v24, %v1587_v23  ;;  %v1445_v40 = vld [vmem:[#allocation14 + $0x90] sm:$0xf0] }
 0x194   :  { %923 = vmatpush.bf16.msra.mxu3 %v1732_v18  ;;  %v1716_v31 = vor.u32 %v1925_v27, %v1715_v25  ;;  %v1443_v32 = vld [vmem:[#allocation14 + $0x80] sm:$0xf]  ;;  %v1857_v33 = vld [vmem:[#allocation14 + $0x8c] sm:$0xf0]  ;;  %936 = vmatpush.bf16.msrb.mxu0 %v1480_v22  ;;  %v1448_v47 = vor.u32 %v1855_v39, %v1445_v40  ;;  %v1851_v51 = vld [vmem:[#allocation14 + $0x64] sm:$0xf] }
 0x195   :  { %v1571_v34 = vld [vmem:[#allocation14 + $0x180] sm:$0xf]  ;;  %v1889_v36 = vld [vmem:[#allocation14 + $0x18c] sm:$0xf0]  ;;  %v1444_v41 = vor.u32 %v1857_v33, %v1443_v32  ;;  %v1429_v52 = vld [vmem:[#allocation14 + $0x70] sm:$0xf0] }
 0x196   :  { %v1699_v37 = vld [vmem:[#allocation14 + $0x280] sm:$0xf]  ;;  %v1921_v38 = vld [vmem:[#allocation14 + $0x28c] sm:$0xf0]  ;;  %898 = vmatpush.bf16.msra.mxu1 %v1460_v26  ;;  %v1572_v42 = vor.u32 %v1889_v36, %v1571_v34  ;;  %v1432_v60 = vor.u32 %v1851_v51, %v1429_v52  ;;  %v1847_v1 = vld [vmem:[#allocation14 + $0x44] sm:$0xf] }
 0x197   :  { %911 = vmatpush.bf16.msra.mxu2 %v1588_v30  ;;  %v1700_v43 = vor.u32 %v1921_v38, %v1699_v37  ;;  %v1427_v44 = vld [vmem:[#allocation14 + $0x60] sm:$0xf]  ;;  %v1853_v45 = vld [vmem:[#allocation14 + $0x6c] sm:$0xf0]  ;;  %v1413_v2 = vld [vmem:[#allocation14 + $0x50] sm:$0xf0] }
 0x198   :  { %924 = vmatpush.bf16.msra.mxu3 %v1716_v31  ;;  %v1555_v46 = vld [vmem:[#allocation14 + $0x160] sm:$0xf]  ;;  %937 = vmatpush.bf16.msrb.mxu0 %v1464_v35  ;;  %v1885_v48 = vld [vmem:[#allocation14 + $0x16c] sm:$0xf0]  ;;  %v1428_v53 = vor.u32 %v1853_v45, %v1427_v44  ;;  %v1416_v9 = vor.u32 %v1847_v1, %v1413_v2  ;;  %v1843_v14 = vld [vmem:[#allocation14 + $0x24] sm:$0xf] }
 0x199   :  { %v1683_v49 = vld [vmem:[#allocation14 + $0x260] sm:$0xf]  ;;  %v1917_v50 = vld [vmem:[#allocation14 + $0x26c] sm:$0xf0]  ;;  %v1556_v54 = vor.u32 %v1885_v48, %v1555_v46  ;;  %v1397_v15 = vld [vmem:[#allocation14 + $0x30] sm:$0xf0] }
 0x19a   :  { %899 = vmatpush.bf16.msra.mxu1 %v1444_v41  ;;  %v1684_v55 = vor.u32 %v1917_v50, %v1683_v49  ;;  %v1411_v56 = vld [vmem:[#allocation14 + $0x40] sm:$0xf]  ;;  %v1849_v57 = vld [vmem:[#allocation14 + $0x4c] sm:$0xf0]  ;;  %v1400_v24 = vor.u32 %v1843_v14, %v1397_v15  ;;  %v1899_v26 = vld [vmem:[#allocation14 + $0x1e4] sm:$0xf]  ;;  %v2442_v50 = vpack.c.bf16 %v2438_v58, %v2438_v58 }
 0x19b   :  { %912 = vmatpush.bf16.msra.mxu2 %v1572_v42  ;;  %v1539_v59 = vld [vmem:[#allocation14 + $0x140] sm:$0xf]  ;;  %v1881_v61 = vld [vmem:[#allocation14 + $0x14c] sm:$0xf0]  ;;  %v1412_v3 = vor.u32 %v1849_v57, %v1411_v56  ;;  %v1621_v27 = vld [vmem:[#allocation14 + $0x1f0] sm:$0xf0] }
 0x19c   :  { %925 = vmatpush.bf16.msra.mxu3 %v1700_v43  ;;  %938 = vmatpush.bf16.msrb.mxu0 %v1448_v47  ;;  %v1667_v62 = vld [vmem:[#allocation14 + $0x240] sm:$0xf]  ;;  %v1913_v63 = vld [vmem:[#allocation14 + $0x24c] sm:$0xf0]  ;;  %v1540_v4 = vor.u32 %v1881_v61, %v1539_v59  ;;  %v1931_v28 = vld [vmem:[#allocation14 + $0x2e4] sm:$0xf]  ;;  %v1624_v39 = vor.u32 %v1899_v26, %v1621_v27 }
 0x19d   :  { %v1668_v5 = vor.u32 %v1913_v63, %v1667_v62  ;;  %v1395_v6 = vld [vmem:[#allocation14 + $0x20] sm:$0xf]  ;;  %v1845_v7 = vld [vmem:[#allocation14 + $0x2c] sm:$0xf0]  ;;  %v1749_v29 = vld [vmem:[#allocation14 + $0x2f0] sm:$0xf0] }
 0x19e   :  { %900 = vmatpush.bf16.msra.mxu1 %v1428_v53  ;;  %v1523_v8 = vld [vmem:[#allocation14 + $0x120] sm:$0xf]  ;;  %v1877_v11 = vld [vmem:[#allocation14 + $0x12c] sm:$0xf0]  ;;  %v1396_v16 = vor.u32 %v1845_v7, %v1395_v6  ;;  %v1499_v30 = vld [vmem:[#allocation14 + $0xe8] sm:$0xf]  ;;  %v1752_v40 = vor.u32 %v1931_v28, %v1749_v29 }
 0x19f   :  { %913 = vmatpush.bf16.msra.mxu2 %v1556_v54  ;;  %v1651_v12 = vld [vmem:[#allocation14 + $0x220] sm:$0xf]  ;;  %v1909_v13 = vld [vmem:[#allocation14 + $0x22c] sm:$0xf0]  ;;  %v1524_v19 = vor.u32 %v1877_v11, %v1523_v8  ;;  %v1870_v32 = vld [vmem:[#allocation14 + $0xf4] sm:$0xf0] }
 0x1a0   :  { %926 = vmatpush.bf16.msra.mxu3 %v1684_v55  ;;  %939 = vmatpush.bf16.msrb.mxu0 %v1432_v60  ;;  %v1379_v17 = vld [vmem:[#allocation14] sm:$0xf]  ;;  %v1841_v18 = vld [vmem:[#allocation14 + $0xc] sm:$0xf0]  ;;  %v1652_v20 = vor.u32 %v1909_v13, %v1651_v12  ;;  %v1839_v33 = vld [vmem:[#allocation14 + $0x4] sm:$0xf]  ;;  %v1500_v42 = vor.u32 %v1870_v32, %v1499_v30 }
 0x1a1   :  { %v1507_v21 = vld [vmem:[#allocation14 + $0x100] sm:$0xf]  ;;  %v1873_v22 = vld [vmem:[#allocation14 + $0x10c] sm:$0xf0]  ;;  %v1380_v31 = vor.u32 %v1841_v18, %v1379_v17  ;;  %v1381_v34 = vld [vmem:[#allocation14 + $0x10] sm:$0xf0] }
 0x1a2   :  { %901 = vmatpush.bf16.msra.mxu1 %v1412_v3  ;;  %v1635_v23 = vld [vmem:[#allocation14 + $0x200] sm:$0xf]  ;;  %v1905_v25 = vld [vmem:[#allocation14 + $0x20c] sm:$0xf0]  ;;  %v1508_v35 = vor.u32 %v1873_v22, %v1507_v21  ;;  %v1627_v37 = vld [vmem:[#allocation14 + $0x1e8] sm:$0xf]  ;;  %v1384_v43 = vor.u32 %v1839_v33, %v1381_v34 }
 0x1a3   :  { %914 = vmatpush.bf16.msra.mxu2 %v1540_v4  ;;  %v1636_v36 = vor.u32 %v1905_v25, %v1635_v23  ;;  %v1902_v38 = vld [vmem:[#allocation14 + $0x1f4] sm:$0xf0]  ;;  %v1895_v41 = vld [vmem:[#allocation14 + $0x1c4] sm:$0xf]  ;;  %v1605_v44 = vld [vmem:[#allocation14 + $0x1d0] sm:$0xf0] }
 0x1a4   :  { %927 = vmatpush.bf16.msra.mxu3 %v1668_v5  ;;  %940 = vmatpush.bf16.msrb.mxu0 %v1416_v9  ;;  %v1927_v45 = vld [vmem:[#allocation14 + $0x2c4] sm:$0xf]  ;;  %v1733_v46 = vld [vmem:[#allocation14 + $0x2d0] sm:$0xf0]  ;;  %v1628_v47 = vor.u32 %v1902_v38, %v1627_v37  ;;  %v1483_v48 = vld [vmem:[#allocation14 + $0xc8] sm:$0xf]  ;;  %v1608_v53 = vor.u32 %v1895_v41, %v1605_v44 }
 0x1a5   :  { %v1866_v49 = vld [vmem:[#allocation14 + $0xd4] sm:$0xf0]  ;;  %v1611_v51 = vld [vmem:[#allocation14 + $0x1c8] sm:$0xf]  ;;  %v1736_v54 = vor.u32 %v1927_v45, %v1733_v46  ;;  %v1891_v55 = vld [vmem:[#allocation14 + $0x1a4] sm:$0xf] }
 0x1a6   :  { %902 = vmatpush.bf16.msra.mxu1 %v1396_v16  ;;  %v1898_v52 = vld [vmem:[#allocation14 + $0x1d4] sm:$0xf0]  ;;  %v1589_v56 = vld [vmem:[#allocation14 + $0x1b0] sm:$0xf0]  ;;  %v1484_v57 = vor.u32 %v1866_v49, %v1483_v48  ;;  %v1923_v59 = vld [vmem:[#allocation14 + $0x2a4] sm:$0xf] }
 0x1a7   :  { %915 = vmatpush.bf16.msra.mxu2 %v1524_v19  ;;  %v1717_v60 = vld [vmem:[#allocation14 + $0x2b0] sm:$0xf0]  ;;  %v307_v61 = vld [vmem:[#allocation2] sm:$0x1]  ;;  %v1612_v62 = vor.u32 %v1898_v52, %v1611_v51  ;;  %v1467_v58 = vld [vmem:[#allocation14 + $0xa8] sm:$0xf]  ;;  %v1592_v4 = vor.u32 %v1891_v55, %v1589_v56 }
 0x1a8   :  { %928 = vmatpush.bf16.msra.mxu3 %v1652_v20  ;;  %941 = vmatpush.bf16.msrb.mxu0 %v1400_v24  ;;  %v1862_v63 = vld [vmem:[#allocation14 + $0xb4] sm:$0xf0]  ;;  %v2445_v1 = vpack.c.bf16 %v307_v61, %v307_v61  ;;  %v1595_v2 = vld [vmem:[#allocation14 + $0x1a8] sm:$0xf]  ;;  %v1720_v5 = vor.u32 %v1923_v59, %v1717_v60  ;;  %v1887_v6 = vld [vmem:[#allocation14 + $0x184] sm:$0xf] }
 0x1a9   :  { %v1894_v3 = vld [vmem:[#allocation14 + $0x1b4] sm:$0xf0]  ;;  %v1468_v7 = vor.u32 %v1862_v63, %v1467_v58  ;;  %v1573_v8 = vld [vmem:[#allocation14 + $0x190] sm:$0xf0]  ;;  %v1919_v9 = vld [vmem:[#allocation14 + $0x284] sm:$0xf] }
 0x1aa   :  { %903 = vmatpush.bf16.msra.mxu1 %v1380_v31  ;;  %v1701_v11 = vld [vmem:[#allocation14 + $0x290] sm:$0xf0]  ;;  %v1596_v12 = vor.u32 %v1894_v3, %v1595_v2  ;;  %v1451_v13 = vld [vmem:[#allocation14 + $0x88] sm:$0xf]  ;;  %v1858_v14 = vld [vmem:[#allocation14 + $0x94] sm:$0xf0]  ;;  %v1576_v17 = vor.u32 %v1887_v6, %v1573_v8 }
 0x1ab   :  { %916 = vmatpush.bf16.msra.mxu2 %v1508_v35  ;;  %v1579_v15 = vld [vmem:[#allocation14 + $0x188] sm:$0xf]  ;;  %v1890_v16 = vld [vmem:[#allocation14 + $0x194] sm:$0xf0]  ;;  %v1704_v18 = vor.u32 %v1919_v9, %v1701_v11  ;;  %v1883_v19 = vld [vmem:[#allocation14 + $0x164] sm:$0xf]  ;;  %v1452_v20 = vor.u32 %v1858_v14, %v1451_v13 }
 0x1ac   :  { %929 = vmatpush.bf16.msra.mxu3 %v1636_v36  ;;  %942 = vmatpush.bf16.msrb.mxu0 %v1384_v43  ;;  %v1557_v21 = vld [vmem:[#allocation14 + $0x170] sm:$0xf0]  ;;  %v1915_v22 = vld [vmem:[#allocation14 + $0x264] sm:$0xf]  ;;  %v1580_v24 = vor.u32 %v1890_v16, %v1579_v15  ;;  %v1435_v25 = vld [vmem:[#allocation14 + $0x68] sm:$0xf] }
 0x1ad   :  { %904 = vmatmul.bf16.vlgmr.msra.gmra.mxu1 %v2445_v1  ;;  %v1685_v23 = vld [vmem:[#allocation14 + $0x270] sm:$0xf0]  ;;  %v1854_v26 = vld [vmem:[#allocation14 + $0x74] sm:$0xf0]  ;;  %v1563_v27 = vld [vmem:[#allocation14 + $0x168] sm:$0xf]  ;;  %v1560_v29 = vor.u32 %v1883_v19, %v1557_v21 }
 0x1ae   :  { %948 = vmatpush.bf16.msrb.mxu1 %v1624_v39  ;;  %917 = vmatmul.bf16.vlgmr.msra.gmra.mxu2 %v2442_v50  ;;  %v1886_v28 = vld [vmem:[#allocation14 + $0x174] sm:$0xf0]  ;;  %v1688_v30 = vor.u32 %v1915_v22, %v1685_v23  ;;  %v1879_v31 = vld [vmem:[#allocation14 + $0x144] sm:$0xf]  ;;  %v1436_v32 = vor.u32 %v1854_v26, %v1435_v25  ;;  %v1541_v33 = vld [vmem:[#allocation14 + $0x150] sm:$0xf0] }
 0x1af   :  { %961 = vmatpush.bf16.msrb.mxu2 %v1752_v40  ;;  %930 = vmatmul.bf16.vlgmr.msra.gmra.mxu3 %v2411_v10  ;;  %v1911_v34 = vld [vmem:[#allocation14 + $0x244] sm:$0xf]  ;;  %v1669_v35 = vld [vmem:[#allocation14 + $0x250] sm:$0xf0]  ;;  %v1564_v36 = vor.u32 %v1886_v28, %v1563_v27  ;;  %v1419_v37 = vld [vmem:[#allocation14 + $0x48] sm:$0xf]  ;;  %v1544_v41 = vor.u32 %v1879_v31, %v1541_v33 }
 0x1b0   :  { %974 = vmatpush.bf16.msrb.mxu3 %v1500_v42  ;;  %987 = vmatpush.bf16.msra.mxu0 %v1628_v47  ;;  %v1850_v38 = vld [vmem:[#allocation14 + $0x54] sm:$0xf0]  ;;  %v1547_v39 = vld [vmem:[#allocation14 + $0x148] sm:$0xf]  ;;  %v1672_v42 = vor.u32 %v1911_v34, %v1669_v35  ;;  %v1875_v43 = vld [vmem:[#allocation14 + $0x124] sm:$0xf] }
 0x1b1   :  { %943 = vmatmul.bf16.vlgmr.msrb.gmra.mxu0 %v2445_v1  ;;  %v1882_v40 = vld [vmem:[#allocation14 + $0x154] sm:$0xf0]  ;;  %v1420_v44 = vor.u32 %v1850_v38, %v1419_v37  ;;  %v1525_v45 = vld [vmem:[#allocation14 + $0x130] sm:$0xf0]  ;;  %v1907_v46 = vld [vmem:[#allocation14 + $0x224] sm:$0xf] }
 0x1b2   :  { %949 = vmatpush.bf16.msrb.mxu1 %v1608_v53  ;;  %v1653_v47 = vld [vmem:[#allocation14 + $0x230] sm:$0xf0]  ;;  %v1548_v48 = vor.u32 %v1882_v40, %v1547_v39  ;;  %v1403_v49 = vld [vmem:[#allocation14 + $0x28] sm:$0xf]  ;;  %v1846_v51 = vld [vmem:[#allocation14 + $0x34] sm:$0xf0] }
 0x1b3   :  { %962 = vmatpush.bf16.msrb.mxu2 %v1736_v54  ;;  %v1531_v52 = vld [vmem:[#allocation14 + $0x128] sm:$0xf]  ;;  %v1878_v53 = vld [vmem:[#allocation14 + $0x134] sm:$0xf0]  ;;  %v1528_v54 = vor.u32 %v1875_v43, %v1525_v45  ;;  %v1656_v55 = vor.u32 %v1907_v46, %v1653_v47  ;;  %v1871_v56 = vld [vmem:[#allocation14 + $0x104] sm:$0xf]  ;;  %v1404_v60 = vor.u32 %v1846_v51, %v1403_v49 }
 0x1b4   :  { %975 = vmatpush.bf16.msrb.mxu3 %v1484_v57  ;;  %988 = vmatpush.bf16.msra.mxu0 %v1612_v62  ;;  %v1509_v57 = vld [vmem:[#allocation14 + $0x110] sm:$0xf0]  ;;  %v1903_v59 = vld [vmem:[#allocation14 + $0x204] sm:$0xf]  ;;  %v1387_v62 = vld [vmem:[#allocation14 + $0x8] sm:$0xf]  ;;  %v1532_v63 = vor.u32 %v1878_v53, %v1531_v52 }
 0x1b5   :  { %v1637_v61 = vld [vmem:[#allocation14 + $0x210] sm:$0xf0]  ;;  %v1842_v58 = vld [vmem:[#allocation14 + $0x14] sm:$0xf0]  ;;  %v1755_v2 = vld [vmem:[#allocation14 + $0x2e8] sm:$0xf]  ;;  %v1512_v8 = vor.u32 %v1871_v56, %v1509_v57 }
 0x1b6   :  { %950 = vmatpush.bf16.msrb.mxu1 %v1592_v4  ;;  %v1934_v3 = vld [vmem:[#allocation14 + $0x2f4] sm:$0xf0]  ;;  %v1868_v4 = vld [vmem:[#allocation14 + $0xec] sm:$0xf]  ;;  %v1640_v9 = vor.u32 %v1903_v59, %v1637_v61  ;;  %v1515_v11 = vld [vmem:[#allocation14 + $0x108] sm:$0xf]  ;;  %v1388_v13 = vor.u32 %v1842_v58, %v1387_v62 }
 0x1b7   :  { %963 = vmatpush.bf16.msrb.mxu2 %v1720_v5  ;;  %v1501_v5 = vld [vmem:[#allocation14 + $0xf8] sm:$0xf0]  ;;  %v1900_v6 = vld [vmem:[#allocation14 + $0x1ec] sm:$0xf]  ;;  %v1756_v14 = vor.u32 %v1934_v3, %v1755_v2  ;;  %v1739_v19 = vld [vmem:[#allocation14 + $0x2c8] sm:$0xf] }
 0x1b8   :  { %976 = vmatpush.bf16.msrb.mxu3 %v1468_v7  ;;  %989 = vmatpush.bf16.msra.mxu0 %v1596_v12  ;;  %v1629_v7 = vld [vmem:[#allocation14 + $0x1f8] sm:$0xf0]  ;;  %v1874_v12 = vld [vmem:[#allocation14 + $0x114] sm:$0xf0]  ;;  %v1932_v15 = vld [vmem:[#allocation14 + $0x2ec] sm:$0xf] }
 0x1b9   :  { %v1757_v16 = vld [vmem:[#allocation14 + $0x2f8] sm:$0xf0]  ;;  %v1864_v21 = vld [vmem:[#allocation14 + $0xcc] sm:$0xf]  ;;  %v1516_v22 = vor.u32 %v1874_v12, %v1515_v11  ;;  %v1926_v33 = vld [vmem:[#allocation14 + $0x2b4] sm:$0xf0] }
 0x1ba   :  { %951 = vmatpush.bf16.msrb.mxu1 %v1576_v17  ;;  %v1504_v17 = vor.u32 %v1868_v4, %v1501_v5  ;;  %v1485_v23 = vld [vmem:[#allocation14 + $0xd8] sm:$0xf0]  ;;  %v1760_v26 = vor.u32 %v1932_v15, %v1757_v16  ;;  %v1928_v28 = vld [vmem:[#allocation14 + $0x2cc] sm:$0xf]  ;;  %v1922_v45 = vld [vmem:[#allocation14 + $0x294] sm:$0xf0] }
 0x1bb   :  { %964 = vmatpush.bf16.msrb.mxu2 %v1704_v18  ;;  %v1632_v18 = vor.u32 %v1900_v6, %v1629_v7  ;;  %v1613_v25 = vld [vmem:[#allocation14 + $0x1d8] sm:$0xf0]  ;;  %v1860_v34 = vld [vmem:[#allocation14 + $0xac] sm:$0xf]  ;;  %v1691_v57 = vld [vmem:[#allocation14 + $0x268] sm:$0xf] }
 0x1bc   :  { %977 = vmatpush.bf16.msrb.mxu3 %v1452_v20  ;;  %990 = vmatpush.bf16.msra.mxu0 %v1580_v24  ;;  %v1930_v20 = vld [vmem:[#allocation14 + $0x2d4] sm:$0xf0]  ;;  %v1896_v24 = vld [vmem:[#allocation14 + $0x1cc] sm:$0xf]  ;;  %v1469_v35 = vld [vmem:[#allocation14 + $0xb8] sm:$0xf0] }
 0x1bd   :  { %v1740_v27 = vor.u32 %v1930_v20, %v1739_v19  ;;  %v1616_v31 = vor.u32 %v1896_v24, %v1613_v25  ;;  %v1597_v37 = vld [vmem:[#allocation14 + $0x1b8] sm:$0xf0]  ;;  %v1924_v40 = vld [vmem:[#allocation14 + $0x2ac] sm:$0xf]  ;;  %v1918_v59 = vld [vmem:[#allocation14 + $0x274] sm:$0xf0] }
 0x1be   :  { %952 = vmatpush.bf16.msrb.mxu1 %v1560_v29  ;;  %v1741_v29 = vld [vmem:[#allocation14 + $0x2d8] sm:$0xf0]  ;;  %v1856_v46 = vld [vmem:[#allocation14 + $0x8c] sm:$0xf]  ;;  %v1692_v2 = vor.u32 %v1918_v59, %v1691_v57  ;;  %v1675_v7 = vld [vmem:[#allocation14 + $0x248] sm:$0xf] }
 0x1bf   :  { %965 = vmatpush.bf16.msrb.mxu2 %v1688_v30  ;;  %v1488_v30 = vor.u32 %v1864_v21, %v1485_v23  ;;  %v1744_v38 = vor.u32 %v1928_v28, %v1741_v29  ;;  %v1453_v47 = vld [vmem:[#allocation14 + $0x98] sm:$0xf0]  ;;  %v1920_v53 = vld [vmem:[#allocation14 + $0x28c] sm:$0xf]  ;;  %v1659_v20 = vld [vmem:[#allocation14 + $0x228] sm:$0xf] }
 0x1c0   :  { %978 = vmatpush.bf16.msrb.mxu3 %v1436_v32  ;;  %991 = vmatpush.bf16.msra.mxu0 %v1564_v36  ;;  %v1723_v32 = vld [vmem:[#allocation14 + $0x2a8] sm:$0xf]  ;;  %v1892_v36 = vld [vmem:[#allocation14 + $0x1ac] sm:$0xf]  ;;  %v1581_v49 = vld [vmem:[#allocation14 + $0x198] sm:$0xf0] }
 0x1c1   :  { %v1724_v39 = vor.u32 %v1926_v33, %v1723_v32  ;;  %v1600_v43 = vor.u32 %v1892_v36, %v1597_v37  ;;  %v1437_v61 = vld [vmem:[#allocation14 + $0x78] sm:$0xf0]  ;;  %v1884_v62 = vld [vmem:[#allocation14 + $0x16c] sm:$0xf]  ;;  %v1910_v21 = vld [vmem:[#allocation14 + $0x234] sm:$0xf0] }
 0x1c2   :  { %953 = vmatpush.bf16.msrb.mxu1 %v1544_v41  ;;  %v1725_v41 = vld [vmem:[#allocation14 + $0x2b8] sm:$0xf0]  ;;  %v1916_v3 = vld [vmem:[#allocation14 + $0x26c] sm:$0xf]  ;;  %v1643_v32 = vld [vmem:[#allocation14 + $0x208] sm:$0xf] }
 0x1c3   :  { %966 = vmatpush.bf16.msrb.mxu2 %v1672_v42  ;;  %v1472_v42 = vor.u32 %v1860_v34, %v1469_v35  ;;  %v1728_v51 = vor.u32 %v1924_v40, %v1725_v41  ;;  %v1565_v58 = vld [vmem:[#allocation14 + $0x178] sm:$0xf0]  ;;  %v1880_v12 = vld [vmem:[#allocation14 + $0x14c] sm:$0xf]  ;;  %v1906_v33 = vld [vmem:[#allocation14 + $0x214] sm:$0xf0] }
 0x1c4   :  { %979 = vmatpush.bf16.msrb.mxu3 %v1420_v44  ;;  %992 = vmatpush.bf16.msra.mxu0 %v1548_v48  ;;  %v1707_v44 = vld [vmem:[#allocation14 + $0x288] sm:$0xf]  ;;  %v1888_v48 = vld [vmem:[#allocation14 + $0x18c] sm:$0xf]  ;;  %v1693_v4 = vld [vmem:[#allocation14 + $0x278] sm:$0xf0]  ;;  %v1568_v6 = vor.u32 %v1884_v62, %v1565_v58 }
 0x1c5   :  { %v1708_v52 = vor.u32 %v1922_v45, %v1707_v44  ;;  %v1584_v56 = vor.u32 %v1888_v48, %v1581_v49  ;;  %v1421_v11 = vld [vmem:[#allocation14 + $0x58] sm:$0xf0]  ;;  %v1912_v16 = vld [vmem:[#allocation14 + $0x24c] sm:$0xf]  ;;  %vm1246_vm13 = vcmask 1040384   ;;  %s1296_s20 = sshll.u32 %s2530_s13, 4  ;;  %s1297_s20 = int_to_ptr.hbm [resolvable:$true] %s1296_s20 }
 0x1c6   :  { %954 = vmatpush.bf16.msrb.mxu1 %v1528_v54  ;;  %v1709_v54 = vld [vmem:[#allocation14 + $0x298] sm:$0xf0]  ;;  %v1876_v24 = vld [vmem:[#allocation14 + $0x12c] sm:$0xf]  ;;  %s2293_s22 = smov [#allocation18]   ;;  %s1307_s8 = sshll.u32 %s2531_s14, 4  ;;  %s1308_s8 = int_to_ptr.hbm [resolvable:$true] %s1307_s8 }
 0x1c7   :  { %967 = vmatpush.bf16.msrb.mxu2 %v1656_v55  ;;  %v1456_v55 = vor.u32 %v1856_v46, %v1453_v47  ;;  %v1405_v23 = vld [vmem:[#allocation14 + $0x38] sm:$0xf0]  ;;  %v1908_v28 = vld [vmem:[#allocation14 + $0x22c] sm:$0xf]  ;;  %s1294_s28 = sshll.u32 %s2293_s22, 4  ;;  %s2294_s3 = smov [#allocation20]   ;;  %s1295_s28 = int_to_ptr.vmem [resolvable:$true] %s1294_s28 }
 0x1c8   :  { %980 = vmatpush.bf16.msrb.mxu3 %v1404_v60  ;;  %993 = vmatpush.bf16.msra.mxu0 %v1532_v63  ;;  %v1852_v60 = vld [vmem:[#allocation14 + $0x6c] sm:$0xf]  ;;  %v1712_v63 = vor.u32 %v1920_v53, %v1709_v54  ;;  %v1533_v25 = vld [vmem:[#allocation14 + $0x138] sm:$0xf0]  ;;  %s1305_s30 = sshll.u32 %s2294_s3, 4  ;;  %s2295_s13 = smov [#allocation17]   ;;  %s1306_s30 = int_to_ptr.vmem [resolvable:$true] %s1305_s30 }
 0x1c9   :  { %v1440_v5 = vor.u32 %v1852_v60, %v1437_v61  ;;  %v1661_v29 = vld [vmem:[#allocation14 + $0x238] sm:$0xf0]  ;;  %v1840_v34 = vld [vmem:[#allocation14 + $0xc] sm:$0xf]  ;;  %s1283_s16 = sshll.u32 %s2295_s13, 4  ;;  %s1285_s18 = sshll.u32 %s2529_s12, 4  ;;  %s1284_s16 = int_to_ptr.vmem [resolvable:$true] %s1283_s16  ;;  %s1286_s18 = int_to_ptr.hbm [resolvable:$true] %s1285_s18 }
 0x1ca   :  { %955 = vmatpush.bf16.msrb.mxu1 %v1512_v8  ;;  %v1914_v8 = vld [vmem:[#allocation14 + $0x254] sm:$0xf0]  ;;  %v1389_v35 = vld [vmem:[#allocation14 + $0x18] sm:$0xf0]  ;;  %v1872_v36 = vld [vmem:[#allocation14 + $0x10c] sm:$0xf] }
 0x1cb   :  { %968 = vmatpush.bf16.msrb.mxu2 %v1640_v9  ;;  %v1848_v9 = vld [vmem:[#allocation14 + $0x4c] sm:$0xf]  ;;  %v1676_v15 = vor.u32 %v1914_v8, %v1675_v7  ;;  %v1517_v37 = vld [vmem:[#allocation14 + $0x118] sm:$0xf0]  ;;  %v1822_v7 = vld [vmem:[#allocation16 + $0x70] sm:$0xf] }
 0x1cc   :  { %981 = vmatpush.bf16.msrb.mxu3 %v1388_v13  ;;  %994 = vmatpush.bf16.msra.mxu0 %v1516_v22  ;;  %v1549_v13 = vld [vmem:[#allocation14 + $0x158] sm:$0xf0]  ;;  %v1844_v22 = vld [vmem:[#allocation14 + $0x2c] sm:$0xf]  ;;  %v1950_v8 = vld [vmem:[#allocation16 + $0x74] sm:$0xf0] }
 0x1cd   :  { %956 = vmatmul.bf16.vlgmr.msrb.gmra.mxu1 %v2442_v50  ;;  %v1552_v19 = vor.u32 %v1880_v12, %v1549_v13  ;;  %v1904_v40 = vld [vmem:[#allocation14 + $0x20c] sm:$0xf]  ;;  %v1645_v41 = vld [vmem:[#allocation14 + $0x218] sm:$0xf0] }
 0x1ce   :  { %1000 = vmatpush.bf16.msra.mxu1 %v1756_v14  ;;  %969 = vmatmul.bf16.vlgmr.msrb.gmra.mxu2 %v2411_v10  ;;  %v1696_v14 = vor.u32 %v1916_v3, %v1693_v4  ;;  %v1648_v44 = vor.u32 %v1904_v40, %v1645_v41  ;;  %v2461_v45 = vld [vmem:[%s2526_s9] sm:$0xf] }
 0x1cf   :  { %1013 = vmatpush.bf16.msra.mxu2 %v1504_v17  ;;  %982 = vmatmul.bf16.vlgmr.msrb.gmra.mxu3 %v2445_v1  ;;  %v1677_v17 = vld [vmem:[#allocation14 + $0x258] sm:$0xf0]  ;;  %v888_v48 = vperm.slane %v2461_v45, 0 }
 0x1d0   :  { %1026 = vmatpush.bf16.msra.mxu3 %v1632_v18  ;;  %1039 = vmatpush.bf16.msrb.mxu0 %v1760_v26  ;;  %v1424_v18 = vor.u32 %v1848_v9, %v1421_v11  ;;  %v1680_v26 = vor.u32 %v1912_v16, %v1677_v17  ;;  %v1823_v9 = vor.u32 %v1950_v8, %v1822_v7  ;;  %v1949_v11 = vld [vmem:[#allocation16 + $0x74] sm:$0xf]  ;;  %v1824_v12 = vld [vmem:[#allocation16 + $0x78] sm:$0xf0]  ;;  %v1948_v16 = vld [vmem:[#allocation16 + $0x64] sm:$0xf0] }
 0x1d1   :  { %995 = vmatmul.bf16.vlgmr.msra.gmra.mxu0 %v2442_v50  ;;  %v1827_v13 = vor.u32 %v1949_v11, %v1824_v12  ;;  %v1947_v17 = vld [vmem:[#allocation16 + $0x64] sm:$0xf]  ;;  %v1937_v7 = vld [vmem:[#allocation16 + $0x14] sm:$0xf]  ;;  %v1776_v12 = vld [vmem:[#allocation16 + $0x18] sm:$0xf0] }
 0x1d2   :  { %1001 = vmatpush.bf16.msra.mxu1 %v1740_v27  ;;  %v1660_v27 = vor.u32 %v1910_v21, %v1659_v20  ;;  %v1816_v20 = vld [vmem:[#allocation16 + $0x68] sm:$0xf0] }
 0x1d3   :  { %1014 = vmatpush.bf16.msra.mxu2 %v1488_v30  ;;  %v1408_v30 = vor.u32 %v1844_v22, %v1405_v23  ;;  %v1819_v21 = vor.u32 %v1947_v17, %v1816_v20  ;;  %v1936_v17 = vld [vmem:[#allocation16 + $0x4] sm:$0xf0]  ;;  %v1768_v20 = vld [vmem:[#allocation16 + $0x8] sm:$0xf0] }
 0x1d4   :  { %1027 = vmatpush.bf16.msra.mxu3 %v1616_v31  ;;  %1040 = vmatpush.bf16.msrb.mxu0 %v1744_v38  ;;  %v1536_v31 = vor.u32 %v1876_v24, %v1533_v25  ;;  %v1664_v38 = vor.u32 %v1908_v28, %v1661_v29  ;;  %v1806_v25 = vld [vmem:[#allocation16 + $0x50] sm:$0xf] }
 0x1d6   :  { %1002 = vmatpush.bf16.msra.mxu1 %v1724_v39  ;;  %v1644_v39 = vor.u32 %v1906_v33, %v1643_v32  ;;  %v890_v33 = vperm.slane %v2461_v45, 2 }
 0x1d7   :  { %1015 = vmatpush.bf16.msra.mxu2 %v1472_v42  ;;  %v1392_v42 = vor.u32 %v1840_v34, %v1389_v35  ;;  %v1798_v34 = vld [vmem:[#allocation16 + $0x40] sm:$0xf]  ;;  %v1944_v35 = vld [vmem:[#allocation16 + $0x44] sm:$0xf0] }
 0x1d8   :  { %1028 = vmatpush.bf16.msra.mxu3 %v1600_v43  ;;  %1041 = vmatpush.bf16.msrb.mxu0 %v1728_v51  ;;  %v1520_v43 = vor.u32 %v1872_v36, %v1517_v37  ;;  %v1943_v36 = vld [vmem:[#allocation16 + $0x44] sm:$0xf]  ;;  %v1799_v37 = vor.u32 %v1944_v35, %v1798_v34 }
 0x1da   :  { %1003 = vmatpush.bf16.msra.mxu1 %v1708_v52 }
 0x1db   :  { %1016 = vmatpush.bf16.msra.mxu2 %v1456_v55 }
 0x1dc   :  { %1029 = vmatpush.bf16.msra.mxu3 %v1584_v56  ;;  %1042 = vmatpush.bf16.msrb.mxu0 %v1712_v63 }
 0x1de   :  { %1004 = vmatpush.bf16.msra.mxu1 %v1692_v2 }
 0x1df   :  { %1017 = vmatpush.bf16.msra.mxu2 %v1440_v5 }
 0x1e0   :  { %1030 = vmatpush.bf16.msra.mxu3 %v1568_v6  ;;  %1043 = vmatpush.bf16.msrb.mxu0 %v1696_v14 }
 0x1e2   :  { %1005 = vmatpush.bf16.msra.mxu1 %v1676_v15  ;;  %v1814_v15 = vld [vmem:[#allocation16 + $0x60] sm:$0xf] }
 0x1e3   :  { %1018 = vmatpush.bf16.msra.mxu2 %v1424_v18 }
 0x1e4   :  { %1031 = vmatpush.bf16.msra.mxu3 %v1552_v19  ;;  %1044 = vmatpush.bf16.msrb.mxu0 %v1680_v26  ;;  %v1815_v19 = vor.u32 %v1948_v16, %v1814_v15  ;;  %v1946_v26 = vld [vmem:[#allocation16 + $0x54] sm:$0xf0]  ;;  %v1779_v15 = vor.u32 %v1937_v7, %v1776_v12  ;;  %v1766_v16 = vld [vmem:[#allocation16] sm:$0xf] }
 0x1e5   :  { %v1807_v29 = vor.u32 %v1946_v26, %v1806_v25  ;;  %v1767_v26 = vor.u32 %v1936_v17, %v1766_v16 }
 0x1e6   :  { %1006 = vmatpush.bf16.msra.mxu1 %v1660_v27  ;;  %v1945_v27 = vld [vmem:[#allocation16 + $0x54] sm:$0xf] }
 0x1e7   :  { %1019 = vmatpush.bf16.msra.mxu2 %v1408_v30  ;;  %v1808_v30 = vld [vmem:[#allocation16 + $0x58] sm:$0xf0] }
 0x1e8   :  { %1032 = vmatpush.bf16.msra.mxu3 %v1536_v31  ;;  %1045 = vmatpush.bf16.msrb.mxu0 %v1664_v38  ;;  %v1811_v32 = vor.u32 %v1945_v27, %v1808_v30  ;;  %v1800_v38 = vld [vmem:[#allocation16 + $0x48] sm:$0xf0] }
 0x1e9   :  { %v1803_v40 = vor.u32 %v1943_v36, %v1800_v38 }
 0x1ea   :  { %1007 = vmatpush.bf16.msra.mxu1 %v1644_v39 }
 0x1eb   :  { %1020 = vmatpush.bf16.msra.mxu2 %v1392_v42  ;;  %v1790_v42 = vld [vmem:[#allocation16 + $0x30] sm:$0xf] }
 0x1ec   :  { %1033 = vmatpush.bf16.msra.mxu3 %v1520_v43  ;;  %1046 = vmatpush.bf16.msrb.mxu0 %v1648_v44  ;;  %v1942_v43 = vld [vmem:[#allocation16 + $0x34] sm:$0xf0]  ;;  %v1941_v44 = vld [vmem:[#allocation16 + $0x34] sm:$0xf] }
 0x1ed   :  { %1008 = vmatmul.bf16.vlgmr.msra.gmra.mxu1 %v2411_v10 }
 0x1ee   :  { %1021 = vmatmul.bf16.vlgmr.msra.gmra.mxu2 %v2445_v1  ;;  %1220 = vmatpush.bf16.msrb.mxu1 %v1823_v9 }
 0x1ef   :  { %1034 = vmatmul.bf16.vlgmr.msra.gmra.mxu3 %v2442_v50  ;;  %1047 = vmatmul.bf16.vlgmr.msrb.gmra.mxu0 %v2411_v10  ;;  %v889_v10 = vperm.slane %v2461_v45, 1 }
 0x1f0   :  { %1233 = vmatpush.bf16.msrb.mxu2 %v1827_v13 }
 0x1f2   :  { %1221 = vmatpush.bf16.msrb.mxu1 %v1815_v19  ;;  %v1935_v19 = vld [vmem:[#allocation16 + $0x4] sm:$0xf] }
 0x1f4   :  { %1234 = vmatpush.bf16.msrb.mxu2 %v1819_v21 }
 0x1f6   :  { %1222 = vmatpush.bf16.msrb.mxu1 %v1807_v29  ;;  %v1771_v29 = vor.u32 %v1935_v19, %v1768_v20 }
 0x1f8   :  { %1235 = vmatpush.bf16.msrb.mxu2 %v1811_v32 }
 0x1fa   :  { %1223 = vmatpush.bf16.msrb.mxu1 %v1799_v37 }
 0x1fc   :  { %1236 = vmatpush.bf16.msrb.mxu2 %v1803_v40 }
 0x22a   :  { %v905_v46 = vpop.f32.mrf.mxu1 }
 0x22b   :  { %v906_v52 = vadd.f32 %v905_v46, %v888_v48  ;;  %v1792_v48 = vld [vmem:[#allocation16 + $0x38] sm:$0xf0] }
 0x22e   :  { %v944_v47 = vpop.f32.mrf.mxu0 }
 0x22f   :  { %v945_v59 = vadd.f32 %v944_v47, %v889_v10  ;;  %v1791_v47 = vor.u32 %v1942_v43, %v1790_v42  ;;  %v1940_v10 = vld [vmem:[#allocation16 + $0x24] sm:$0xf0] }
 0x231   :  { %v918_v49 = vpop.f32.mrf.mxu2  ;;  %1224 = vmatpush.bf16.msrb.mxu1 %v1791_v47 }
 0x232   :  { %v931_v51 = vpop.f32.mrf.mxu3  ;;  %v907_v53 = vpop.f32.mrf.mxu1  ;;  %v919_v55 = vadd.f32 %v918_v49, %v906_v52  ;;  %v1795_v52 = vor.u32 %v1941_v44, %v1792_v48 }
 0x234   :  { %v932_v50 = vadd.f32 %v931_v51, %v919_v55  ;;  %1237 = vmatpush.bf16.msrb.mxu2 %v1795_v52 }
 0x236   :  { %v946_v54 = vpop.f32.mrf.mxu0  ;;  %v1761_v57 = vmul.f32 -1.442695, %v932_v50 }
 0x238   :  { %1979 = vpow2.f32 %v1761_v57  ;;  %v1782_v57 = vld [vmem:[#allocation16 + $0x20] sm:$0xf] }
 0x239   :  { %v920_v1 = vpop.f32.mrf.mxu2 }
 0x23a   :  { %v933_v56 = vpop.f32.mrf.mxu3 }
 0x23e   :  { %v1980_v61 = vpop.eup %1979 }
 0x23f   :  { %v2465_v63 = vadd.f32 1.0, %v1980_v61  ;;  %v1783_v61 = vor.u32 %v1940_v10, %v1782_v57 }
 0x241   :  { %1981 = vrcp.f32 %v2465_v63  ;;  %v1065_v54 = vand.u32 2147483647, %v2465_v63  ;;  %v1067_v55 = vand.u32 2147483648, %v2465_v63  ;;  %vm1061_vm1 = vweird.f32 %v2465_v63  ;;  %1225 = vmatpush.bf16.msrb.mxu1 %v1783_v61 }
 0x243   :  { %vm1066_vm7 = vcmp.eq.f32.partialorder %v1065_v54, 8.507059e+37 }
 0x247   :  { %v2468_v22 = vpop.eup %1981 }
 0x248   :  { %v1057_v31 = vmul.f32 %v2468_v22, %v2465_v63  ;;  %vm1062_vm2 = vweird.f32 %v2468_v22  ;;  %v1068_v63 = vor.u32 1.1754944e-38, %v1067_v55 }
 0x249   :  { %vm2489_vm4 = vmor %vm1061_vm1, %vm1062_vm2 }
 0x24a   :  { %v957_v60 = vpop.f32.mrf.mxu1  ;;  %v1058_v39 = vsub.f32 1.0, %v1057_v31 }
 0x24b   :  { %v958_v62 = vadd.f32 %v957_v60, %v945_v59 }
 0x24c   :  { %v1059_v51 = vmul.f32 %v2468_v22, %v1058_v39 }
 0x24e   :  { %v996_v58 = vpop.f32.mrf.mxu0 }
 0x251   :  { %v970_v2 = vpop.f32.mrf.mxu2 }
 0x252   :  { %v971_v3 = vadd.f32 %v970_v2, %v958_v62  ;;  %v983_v4 = vpop.f32.mrf.mxu3  ;;  %v959_v6 = vpop.f32.mrf.mxu1  ;;  %v1939_v62 = vld [vmem:[#allocation16 + $0x24] sm:$0xf] }
 0x253   :  { %v984_v41 = vadd.f32 %v983_v4, %v890_v33  ;;  %v1938_v6 = vld [vmem:[#allocation16 + $0x14] sm:$0xf0] }
 0x254   :  { %v1762_v5 = vmul.f32 -1.442695, %v971_v3  ;;  %v1060_v3 = vadd.f32 %v2468_v22, %v1059_v51 }
 0x255   :  { %v997_v53 = vadd.f32 %v996_v58, %v984_v41  ;;  %v1784_v58 = vld [vmem:[#allocation16 + $0x28] sm:$0xf0] }
 0x256   :  { %1983 = vpow2.f32 %v1762_v5  ;;  %v998_v14 = vpop.f32.mrf.mxu0  ;;  %v1787_v4 = vor.u32 %v1939_v62, %v1784_v58  ;;  %v1774_v5 = vld [vmem:[#allocation16 + $0x10] sm:$0xf]  ;;  %v1064_v21 = vsel %vm2489_vm4, %v2468_v22, %v1060_v3 }
 0x257   :  { %v1775_v11 = vor.u32 %v1938_v6, %v1774_v5  ;;  %v891_v14 = vperm.slane %v2461_v45, 3  ;;  %v1069_v31 = vsel %vm1066_vm7, %v1068_v63, %v1064_v21  ;;  %v1273_v63 = vlaneseq }
 0x258   :  { %1238 = vmatpush.bf16.msrb.mxu2 %v1787_v4 }
 0x259   :  { %v972_v18 = vpop.f32.mrf.mxu2  ;;  %1226 = vmatpush.bf16.msrb.mxu1 %v1775_v11  ;;  %vm1275_vm14 = vcmp.lt.s32.totalorder %v1273_v63, 256 }
 0x25a   :  { %v985_v23 = vpop.f32.mrf.mxu3 }
 0x25c   :  { %v1984_v24 = vpop.eup %1983  ;;  %1239 = vmatpush.bf16.msrb.mxu2 %v1779_v15 }
 0x25d   :  { %v2470_v28 = vadd.f32 1.0, %v1984_v24  ;;  %1227 = vmatpush.bf16.msrb.mxu1 %v1767_v26 }
 0x25f   :  { %1985 = vrcp.f32 %v2470_v28  ;;  %v1086_v56 = vand.u32 2147483648, %v2470_v28  ;;  %v1084_v60 = vand.u32 2147483647, %v2470_v28  ;;  %vm1080_vm5 = vweird.f32 %v2470_v28 }
 0x260   :  { %1240 = vmatpush.bf16.msrb.mxu2 %v1771_v29 }
 0x261   :  { %v1087_v18 = vor.u32 1.1754944e-38, %v1086_v56  ;;  %vm1085_vm8 = vcmp.eq.f32.partialorder %v1084_v60, 8.507059e+37 }
 0x265   :  { %v1986_v46 = vpop.eup %1985 }
 0x266   :  { %v1076_v49 = vmul.f32 %v1986_v46, %v2470_v28  ;;  %vm1081_vm3 = vweird.f32 %v1986_v46 }
 0x267   :  { %vm1082_vm6 = vmor %vm1080_vm5, %vm1081_vm3 }
 0x268   :  { %v1077_v1 = vsub.f32 1.0, %v1076_v49 }
 0x26a   :  { %v1009_v50 = vpop.f32.mrf.mxu1  ;;  %v1078_v2 = vmul.f32 %v1986_v46, %v1077_v1  ;;  %v1134_v1 = vld [vmem:[%s2528_s11] sm:$0x3] }
 0x26b   :  { %v1010_v59 = vadd.f32 %v1009_v50, %v997_v53  ;;  %v1216_v50 = vperm.slane %v1134_v1, 0  ;;  %v1217_v57 = vperm.slane %v1134_v1, 1 }
 0x26c   :  { %v1048_v9 = vpop.f32.mrf.mxu0  ;;  %v1079_v13 = vadd.f32 %v1986_v46, %v1078_v2 }
 0x26d   :  { %1987 = vtanh.f32 %v1010_v59 }
 0x26e   :  { %v1083_v23 = vsel %vm1082_vm6, %v1986_v46, %v1079_v13 }
 0x26f   :  { %v1088_v24 = vsel %vm1085_vm8, %v1087_v18, %v1083_v23 }
 0x270   :  { %v1110_v32 = vmul.f32 %v1088_v24, %v2406_v0 }
 0x271   :  { %v1022_v25 = vpop.f32.mrf.mxu2 }
 0x272   :  { %v1035_v45 = vpop.f32.mrf.mxu3  ;;  %v1023_v27 = vadd.f32 %v1022_v25, %v891_v14  ;;  %v1011_v28 = vpop.f32.mrf.mxu1 }
 0x273   :  { %v1988_v30 = vpop.eup %1987 }
 0x274   :  { %v1111_v33 = vmul.f32 %v1988_v30, %v1069_v31  ;;  %v1036_v34 = vadd.f32 %v1035_v45, %v1023_v27  ;;  %v1050_v35 = vpop.f32.mrf.mxu0 }
 0x276   :  { %v1112_v22 = vadd.f32 %v1111_v33, %v1110_v32  ;;  %v1049_v36 = vadd.f32 %v1048_v9, %v1036_v34 }
 0x278   :  { %1116 = vst [vmem:[#allocation20] sm:$0x1] %v1112_v22  ;;  %v1763_v37 = vmul.f32 -1.442695, %v1049_v36 }
 0x279   :  { %v1024_v38 = vpop.f32.mrf.mxu2 }
 0x27a   :  { %v1037_v39 = vpop.f32.mrf.mxu3  ;;  %1989 = vpow2.f32 %v1763_v37 }
 0x280   :  { %v1990_v40 = vpop.eup %1989 }
 0x281   :  { %v1094_v41 = vadd.f32 1.0, %v1990_v40 }
 0x283   :  { %1991 = vrcp.f32 %v1094_v41  ;;  %v1106_v0 = vand.u32 2147483648, %v1094_v41  ;;  %v1104_v47 = vand.u32 2147483647, %v1094_v41  ;;  %vm1100_vm10 = vweird.f32 %v1094_v41 }
 0x284   :  { %1993 = vtanh.f32 %v1112_v22 }
 0x285   :  { %v1107_v49 = vor.u32 1.1754944e-38, %v1106_v0  ;;  %vm1105_vm12 = vcmp.eq.f32.partialorder %v1104_v47, 8.507059e+37 }
 0x289   :  { %v1992_v42 = vpop.eup %1991 }
 0x28a   :  { %v1096_v43 = vmul.f32 %v1992_v42, %v1094_v41  ;;  %vm1101_vm9 = vweird.f32 %v1992_v42  ;;  %v1994_v52 = vpop.eup %1993 }
 0x28b   :  { %vm1102_vm11 = vmor %vm1100_vm10, %vm1101_vm9 }
 0x28c   :  { %v1097_v44 = vsub.f32 1.0, %v1096_v43 }
 0x28e   :  { %v1098_v46 = vmul.f32 %v1992_v42, %v1097_v44 }
 0x290   :  { %v1099_v48 = vadd.f32 %v1992_v42, %v1098_v46 }
 0x292   :  { %v1103_v51 = vsel %vm1102_vm11, %v1992_v42, %v1099_v48 }
 0x293   :  { %v1108_v53 = vsel %vm1105_vm12, %v1107_v49, %v1103_v51 }
 0x294   :  { %v1114_v54 = vmul.f32 %v1994_v52, %v1108_v53 }
 0x296   :  { %v1117_v55 = vpack.c.bf16 %v1114_v54, %v1114_v54  ;;  %1115 = vst [vmem:[#allocation18] sm:$0x1] %v1114_v54 }
 0x297   :  { %1299 = dma.vmem_to_hbm [thread:$0]  %s1295_s28, 16, %s1297_s20, [#allocation19]  }
 0x298   :  { %1228 = vmatmul.bf16.vlgmr.msrb.gmra.mxu1 %v1117_v55  ;;  %1241 = vmatmul.bf16.vlgmr.msrb.gmra.mxu2 %v1117_v55  ;;  %1310 = dma.vmem_to_hbm [thread:$0]  %s1306_s30, 16, %s1308_s8, [#allocation19]  }
 0x315   :  { %v1229_v56 = vpop.f32.mrf.mxu1 }
 0x316   :  { %v1230_v10 = vadd.f32 %v1229_v56, %v1216_v50 }
 0x318   :  { %v1247_v62 = vsel %vm1246_vm13, %v1230_v10, -inf }
 0x31b   :  { %v1242_v59 = vpop.f32.mrf.mxu2 }
 0x31c   :  { %v1243_v60 = vadd.f32 %v1242_v59, %v1217_v57 }
 0x31d   :  { %v1231_v61 = vpop.f32.mrf.mxu1 }
 0x31e   :  { %v1248_v58 = vsel %vm1246_vm13, %v1243_v60, -inf }
 0x31f   :  { %v1249_v2 = vmax.f32 %v1247_v62, %v1248_v58 }
 0x321   :  { %1250 = vmax.xlane.f32.xlu0 %v1249_v2 }
 0x323   :  { %v1244_v3 = vpop.f32.mrf.mxu2 }
 0x394   :  { %v1251_v4 = vpop.xlane.xlu0 %1250 }
 0x395   :  { %v1252_v5 = vsub.f32 %v1230_v10, %v1251_v4  ;;  %v1253_v6 = vsub.f32 %v1243_v60, %v1251_v4 }
 0x397   :  { %v1254_v7 = vmul.f32 1.442695, %v1252_v5  ;;  %v1256_v8 = vmul.f32 1.442695, %v1253_v6 }
 0x399   :  { %1995 = vpow2.f32 %v1254_v7 }
 0x39a   :  { %1997 = vpow2.f32 %v1256_v8 }
 0x39f   :  { %v1996_v9 = vpop.eup %1995 }
 0x3a0   :  { %v1998_v11 = vpop.eup %1997  ;;  %v1258_v12 = vsel %vm1246_vm13, %v1996_v9, 0.0 }
 0x3a1   :  { %v1259_v13 = vsel %vm1246_vm13, %v1998_v11, 0.0 }
 0x3a2   :  { %v1260_v14 = vadd.f32 %v1259_v13, %v1258_v12 }
 0x3a4   :  { %1261 = vadd.xlane.f32.xlu0 %v1260_v14 }
 0x417   :  { %v1262_v15 = vpop.xlane.xlu0 %1261 }
 0x418   :  { %1999 = vlog2.f32 %v1262_v15 }
 0x41e   :  { %v2000_v16 = vpop.eup %1999 }
 0x41f   :  { %v1264_v17 = vmul.f32 0.6931472, %v2000_v16 }
 0x421   :  { %v1265_v18 = vadd.f32 %v1264_v17, %v1251_v4 }
 0x423   :  { %v1267_v19 = vsub.f32 %v1243_v60, %v1265_v18  ;;  %v1266_v20 = vsub.f32 %v1230_v10, %v1265_v18 }
 0x425   :  { %v1270_v21 = vrot.slane %v1267_v19, 7 }
 0x427   :  { %v1271_v23 = vsel %vm1246_vm13, %v1266_v20, %v1270_v21 }
 0x428   :  { %1277 = vst.msk [vmem:[#allocation17] sm:$0x3] %vm1275_vm14, %v1271_v23 }
 0x429   :  { %1288 = dma.vmem_to_hbm [thread:$0]  %s1284_s16, 32, %s1286_s18, [#allocation7]  }
 0x42a   :  { %2275 = dma.done.wait [#allocation7], 32  }
 0x42b   :  { %2276 = vsyncadd [#allocation7], 4294967264 }
 0x42c   :  { %2277 = dma.done.wait [#allocation19], 32  }
 0x42d   :  { %2278 = vsyncadd [#allocation19], 4294967264 }
 0x42e   :  { %1327 = vsyncpa [#allocation6], 1 }
 0x42f   :  { %1328 = vsyncpa [#allocation9], 1 }
 0x430   :  { %1329 = vsyncpa [#allocation12], 1 }
 0x431   :  { %1330 = vsyncpa [#allocation15], 1 }
 0x432   :  { %1331 = vsyncpa [#allocation7], 1 }
 0x433   :  { %1332 = vsyncpa [#allocation19], 1 }
 0x434   :  { %1333 = vsyncmov [#allocation3] }
 0x437   :  { %s1334_s12 = vpop.sfrf %1333 }
 0x438   :  { %p1828_p7 = scmp.ne.s32.totalorder %s1334_s12, 0 }
 0x43a   :  { %1338 = shalt.err (%p1828_p7)  }

</bundles_post_ra>
